<compile_context>
chip_gen: v5e
topology: v5e:2x2
jax: 0.10.0
libtpu: 0.0.40
codegen_flags: <defaults>
</compile_context>

<pallas_src>
import jax
import jax.numpy as jnp
import numpy as np
from jax import lax
from jax.experimental import pallas as pl
from jax.experimental.pallas import tpu as pltpu


# ------------------------------- fused kernel -------------------------------

def _fused_kernel(x_ref, w1r, b1r, w2r, b2r, w3r, b3r, wfr, bfr, wvar, bvar,
                  out_ref, a1_ref, a2_ref, fc_ref):
    f32 = jnp.float32
    bf16 = jnp.bfloat16
    cstd = x_ref.shape[-1]            # 16 * in_channels (space-to-depth channels)
    hidden = wfr.shape[1]

    # conv1: space-to-depth input (21, 21, cstd) -> a1 (20, 20, 32); k=2, s=1.
    def conv1_row(oh, c):
        acc = jnp.zeros((20, 32), dtype=f32)
        for idx, (dh, dw) in enumerate(((0, 0), (0, 1), (1, 0), (1, 1))):
            piece = x_ref[oh + dh, dw:dw + 20, :].astype(bf16)          # (20, cstd)
            wblk = w1r[idx * cstd:(idx + 1) * cstd, :]                  # (cstd, 32)
            acc = acc + jnp.dot(piece, wblk, preferred_element_type=f32)
        a1_ref[oh, :, :] = jnp.maximum(acc + b1r[...], 0.0)
        return c

    lax.fori_loop(0, 20, conv1_row, 0)

    # conv2: a1 (20, 20, 32) -> a2 (9, 9, 64); k=4, s=2 (strided sublane reads).
    def conv2_row(oh2, c):
        acc = jnp.zeros((9, 64), dtype=f32)
        for kh in range(4):
            row = 2 * oh2 + kh
            for kw in range(4):
                piece = a1_ref[row, pl.ds(kw, 9, 2), :].astype(bf16)    # (9, 32)
                wblk = w2r[(kh * 4 + kw) * 32:(kh * 4 + kw + 1) * 32, :]
                acc = acc + jnp.dot(piece, wblk, preferred_element_type=f32)
        a2_ref[oh2, :, :] = jnp.maximum(acc + b2r[...], 0.0)
        return c

    lax.fori_loop(0, 9, conv2_row, 0)

    # conv3 (k=3, s=1) fused with the fc contraction; wf's rows were permuted once
    # at init so this NHWC traversal reproduces torch's (C, H, W) flatten order.
    fc_ref[...] = bfr[...]

    def conv3_row(oh3, c):
        acc = jnp.zeros((7, 64), dtype=f32)
        for kh in range(3):
            for kw in range(3):
                piece = a2_ref[oh3 + kh, kw:kw + 7, :].astype(bf16)     # (7, 64)
                wblk = w3r[(kh * 3 + kw) * 64:(kh * 3 + kw + 1) * 64, :]
                acc = acc + jnp.dot(piece, wblk, preferred_element_type=f32)
        v = jnp.maximum(acc + b3r[...], 0.0)                            # (7, 64) f32
        contrib = jnp.zeros((1, hidden), dtype=f32)
        for ow3 in range(7):
            base = pl.multiple_of((oh3 * 7 + ow3) * 64, 64)
            contrib = contrib + jnp.dot(v[ow3:ow3 + 1, :].astype(bf16),
                                        wfr[pl.ds(base, 64), :],
                                        preferred_element_type=f32)
        fc_ref[...] = fc_ref[...] + contrib
        return c

    lax.fori_loop(0, 7, conv3_row, 0)

    # dueling head: single fused [V | A] matmul, mean-subtracted advantage.
    x_fc = jnp.maximum(fc_ref[...], 0.0).astype(bf16)                   # (1, hidden)
    y = jnp.dot(x_fc, wvar[...], preferred_element_type=f32) + bvar[...]
    adv = y[:, 1:]
    q = y[:, 0:1] + adv - jnp.mean(adv, axis=1, keepdims=True)
    out_ref[...] = q.astype(out_ref.dtype)


# -------------------------- params (torch layout) ----------------------------

def init_params(key, in_channels, hidden_size, output_size):
    ks = jax.random.split(key, 12)

    def pair(kw_, kb_, fan_in, shape_w, shape_b):
        bound = 1.0 / float(np.sqrt(fan_in))
        w = jax.random.uniform(kw_, shape_w, jnp.float32, -bound, bound)
        b = jax.random.uniform(kb_, shape_b, jnp.float32, -bound, bound)
        return w, b

    p = {}
    p["w1"], p["b1"] = pair(ks[0], ks[1], in_channels * 8 * 8, (32, in_channels, 8, 8), (32,))
    p["w2"], p["b2"] = pair(ks[2], ks[3], 32 * 4 * 4, (64, 32, 4, 4), (64,))
    p["w3"], p["b3"] = pair(ks[4], ks[5], 64 * 3 * 3, (64, 64, 3, 3), (64,))
    p["wf"], p["bf"] = pair(ks[6], ks[7], 7 * 7 * 64, (7 * 7 * 64, hidden_size), (hidden_size,))
    p["wv"], p["bv"] = pair(ks[8], ks[9], hidden_size, (hidden_size, 1), (1,))
    p["wa"], p["ba"] = pair(ks[10], ks[11], hidden_size, (hidden_size, output_size), (output_size,))
    return p


def prepare_params(p):
    """One-time repack of torch-layout params into kernel-ready bf16 matmul operands."""
    bf16, f32 = jnp.bfloat16, jnp.float32
    hidden = p["wf"].shape[1]
    cin = p["w1"].shape[1]

    # conv1 -> (64*cin, 32): rows ordered (dh, dw, ph, pw, cin); kh=4*dh+ph, kw=4*dw+pw,
    # matching the space-to-depth channel order (ph, pw, cin) and the kernel's shifts.
    w1 = p["w1"].reshape(32, cin, 2, 4, 2, 4).transpose(2, 4, 3, 5, 1, 0)
    w1 = w1.reshape(2 * 2 * 4 * 4 * cin, 32)
    # conv2 -> (512, 64), rows ordered (kh, kw, cin)
    w2 = p["w2"].transpose(2, 3, 1, 0).reshape(4 * 4 * 32, 64)
    # conv3 -> (576, 64), rows ordered (kh, kw, cin)
    w3 = p["w3"].transpose(2, 3, 1, 0).reshape(3 * 3 * 64, 64)
    # fc: torch (C, H, W) flatten rows -> kernel's NHWC (H, W, C) row order
    wf = p["wf"].reshape(64, 7, 7, hidden).transpose(1, 2, 0, 3).reshape(7 * 7 * 64, hidden)
    # fused dueling head: [V | A]
    wva = jnp.concatenate([p["wv"], p["wa"]], axis=1)
    bva = jnp.concatenate([p["bv"].reshape(1, 1), p["ba"].reshape(1, -1)], axis=1)

    return {
        "w1": w1.astype(bf16), "b1": p["b1"].reshape(1, -1).astype(f32),
        "w2": w2.astype(bf16), "b2": p["b2"].reshape(1, -1).astype(f32),
        "w3": w3.astype(bf16), "b3": p["b3"].reshape(1, -1).astype(f32),
        "wf": wf.astype(bf16), "bf": p["bf"].reshape(1, -1).astype(f32),
        "wva": wva.astype(bf16), "bva": bva.astype(f32),
    }


# --------------------------------- forward ----------------------------------

@jax.jit
def dueling_q_forward(kparams, x):
    """x: (B, C, 84, 84) or (C, 84, 84) NCHW; same semantics as the torch module."""
    if x.ndim == 3:
        x = x[None]
    x = x.astype(jnp.float32)
    B, C, H, W = x.shape
    assert H == 84 and W == 84, "module geometry (7*7*64 flatten) requires 84x84 input"

    # Pure layout, no duplication: NCHW -> NHWC -> space-to-depth(4) = (B, 21, 21, 16C).
    xs = x.transpose(0, 2, 3, 1)
    xs = xs.reshape(B, H // 4, 4, W // 4, 4, C)
    xs = xs.transpose(0, 1, 3, 2, 4, 5).reshape(B, H // 4, W // 4, 16 * C)

    n_out = kparams["wva"].shape[1] - 1
    hidden = kparams["wf"].shape[1]

    out = pl.pallas_call(
        _fused_kernel,
        out_shape=jax.ShapeDtypeStruct((B, 1, n_out), jnp.float32),
        grid=(B,),
        in_specs=[
            pl.BlockSpec((None, H // 4, W // 4, 16 * C), lambda b: (b, 0, 0, 0)),
            pl.BlockSpec(kparams["w1"].shape, lambda b: (0, 0)),
            pl.BlockSpec(kparams["b1"].shape, lambda b: (0, 0)),
            pl.BlockSpec(kparams["w2"].shape, lambda b: (0, 0)),
            pl.BlockSpec(kparams["b2"].shape, lambda b: (0, 0)),
            pl.BlockSpec(kparams["w3"].shape, lambda b: (0, 0)),
            pl.BlockSpec(kparams["b3"].shape, lambda b: (0, 0)),
            pl.BlockSpec(kparams["wf"].shape, lambda b: (0, 0)),
            pl.BlockSpec(kparams["bf"].shape, lambda b: (0, 0)),
            pl.BlockSpec(kparams["wva"].shape, lambda b: (0, 0)),
            pl.BlockSpec(kparams["bva"].shape, lambda b: (0, 0)),
        ],
        out_specs=pl.BlockSpec((None, 1, n_out), lambda b: (b, 0, 0)),
        scratch_shapes=[
            pltpu.VMEM((20, 20, 32), jnp.float32),   # conv1 activations (VMEM-resident)
            pltpu.VMEM((9, 9, 64), jnp.float32),     # conv2 activations (VMEM-resident)
            pltpu.VMEM((1, hidden), jnp.float32),    # fc accumulator
        ],
        compiler_params=pltpu.CompilerParams(dimension_semantics=("parallel",)),
    )(xs, kparams["w1"], kparams["b1"], kparams["w2"], kparams["b2"],
      kparams["w3"], kparams["b3"], kparams["wf"], kparams["bf"],
      kparams["wva"], kparams["bva"])
    return out.reshape(B, n_out)


def reference_forward(p, x):
    """Pure-JAX f32 reference (torch-layout params) for a correctness sanity check."""
    if x.ndim == 3:
        x = x[None]
    x = x.astype(jnp.float32)

    def conv(x, w, b, s):
        y = lax.conv_general_dilated(x, w, (s, s), "VALID",
                                     dimension_numbers=("NCHW", "OIHW", "NCHW"))
        return jax.nn.relu(y + b[None, :, None, None])

    x = conv(x, p["w1"], p["b1"], 4)
    x = conv(x, p["w2"], p["b2"], 2)
    x = conv(x, p["w3"], p["b3"], 1)
    x = x.reshape(x.shape[0], -1)
    x = jax.nn.relu(x @ p["wf"] + p["bf"])
    v = x @ p["wv"] + p["bv"]
    a = x @ p["wa"] + p["ba"]
    return v + (a - jnp.mean(a, axis=1, keepdims=True))


if __name__ == "__main__":
    # Module geometry is fixed by the 7*7*64 flatten: input must be (C=4, 84, 84).
    batch, in_channels, spatial = 2, 4, 84
    hidden_size, output_size = 32, 4

    key = jax.random.PRNGKey(0)
    k_x, k_p = jax.random.split(key)
    x = jax.random.uniform(k_x, (batch, in_channels, spatial, spatial), jnp.float32)

    raw_params = init_params(k_p, in_channels, hidden_size, output_size)
    kparams = prepare_params(raw_params)           # one-time weight repack (bf16)

    q = jax.block_until_ready(dueling_q_forward(kparams, x))
    q_ref = jax.block_until_ready(reference_forward(raw_params, x))
    np.testing.assert_allclose(np.asarray(q), np.asarray(q_ref), rtol=2e-2, atol=2e-2)

    assert q.shape == (batch, output_size) and q.dtype == jnp.float32
    print("KERNEL_OK")
</pallas_src>

<mosaic_0001>
module attributes {stable_mosaic.version = 11 : i64} {
  func.func @_fused_kernel(%arg0: i32, %arg1: memref<1x21x21x64xf32, #tpu.memory_space<vmem>>, %arg2: memref<256x32xbf16, #tpu.memory_space<vmem>>, %arg3: memref<1x32xf32, #tpu.memory_space<vmem>>, %arg4: memref<512x64xbf16, #tpu.memory_space<vmem>>, %arg5: memref<1x64xf32, #tpu.memory_space<vmem>>, %arg6: memref<576x64xbf16, #tpu.memory_space<vmem>>, %arg7: memref<1x64xf32, #tpu.memory_space<vmem>>, %arg8: memref<3136x32xbf16, #tpu.memory_space<vmem>>, %arg9: memref<1x32xf32, #tpu.memory_space<vmem>>, %arg10: memref<32x5xbf16, #tpu.memory_space<vmem>>, %arg11: memref<1x5xf32, #tpu.memory_space<vmem>>, %arg12: memref<1x1x4xf32, #tpu.memory_space<vmem>>, %arg13: memref<20x20x32xf32, #tpu.memory_space<vmem>>, %arg14: memref<9x9x64xf32, #tpu.memory_space<vmem>>, %arg15: memref<1x32xf32, #tpu.memory_space<vmem>>) attributes {dimension_semantics = [#tpu.dimension_semantics<parallel>], iteration_bounds = array<i64: 2>, scalar_prefetch = 0 : i64, scratch_operands = 3 : i64, tpu.core_type = #tpu.core_type<tc>, window_params = [{transform_indices = @transform_0, window_bounds = array<i64: 1, 21, 21, 64>}, {pipeline_mode = #tpu.pipeline_mode<synchronous>, transform_indices = @transform_1, window_bounds = array<i64: 256, 32>}, {pipeline_mode = #tpu.pipeline_mode<synchronous>, transform_indices = @transform_2, window_bounds = array<i64: 1, 32>}, {pipeline_mode = #tpu.pipeline_mode<synchronous>, transform_indices = @transform_3, window_bounds = array<i64: 512, 64>}, {pipeline_mode = #tpu.pipeline_mode<synchronous>, transform_indices = @transform_4, window_bounds = array<i64: 1, 64>}, {pipeline_mode = #tpu.pipeline_mode<synchronous>, transform_indices = @transform_5, window_bounds = array<i64: 576, 64>}, {pipeline_mode = #tpu.pipeline_mode<synchronous>, transform_indices = @transform_6, window_bounds = array<i64: 1, 64>}, {pipeline_mode = #tpu.pipeline_mode<synchronous>, transform_indices = @transform_7, window_bounds = array<i64: 3136, 32>}, {pipeline_mode = #tpu.pipeline_mode<synchronous>, transform_indices = @transform_8, window_bounds = array<i64: 1, 32>}, {pipeline_mode = #tpu.pipeline_mode<synchronous>, transform_indices = @transform_9, window_bounds = array<i64: 32, 5>}, {pipeline_mode = #tpu.pipeline_mode<synchronous>, transform_indices = @transform_10, window_bounds = array<i64: 1, 5>}, {transform_indices = @transform_11, window_bounds = array<i64: 1, 1, 4>}]} {
    %c0_i32 = arith.constant 0 : i32
    %c20_i32 = arith.constant 20 : i32
    %0 = arith.addi %c0_i32, %c20_i32 : i32
    %c1_i32 = arith.constant 1 : i32
    scf.for %arg16 = %c0_i32 to %0 step %c1_i32  : i32 {
      %cst_22 = arith.constant 0.000000e+00 : f32
      %26 = vector.broadcast %cst_22 : f32 to vector<20x32xf32>
      %c0_i32_23 = arith.constant 0 : i32
      %27 = arith.addi %arg16, %c0_i32_23 : i32
      %c0_24 = arith.constant 0 : index
      %28 = arith.index_cast %27 : i32 to index
      %c0_25 = arith.constant 0 : index
      %c0_26 = arith.constant 0 : index
      %29 = vector.load %arg1[%c0_24, %28, %c0_25, %c0_26] : memref<1x21x21x64xf32, #tpu.memory_space<vmem>>, vector<1x1x20x64xf32>
      %30 = vector.shape_cast %29 : vector<1x1x20x64xf32> to vector<20x64xf32>
      %31 = arith.truncf %30 : vector<20x64xf32> to vector<20x64xbf16>
      %c0_27 = arith.constant 0 : index
      %c0_28 = arith.constant 0 : index
      %32 = vector.load %arg2[%c0_27, %c0_28] : memref<256x32xbf16, #tpu.memory_space<vmem>>, vector<64x32xbf16>
      %cst_29 = arith.constant dense<0.000000e+00> : vector<20x32xf32>
      %33 = tpu.matmul %31, %32, %cst_29 {dimension_numbers = #tpu.dot_dimension_numbers<[1], [0], [0], [1], [0, 0, 1, 1], [], []>} : vector<20x64xbf16>, vector<64x32xbf16>, vector<20x32xf32> -> vector<20x32xf32>
      %34 = arith.addf %26, %33 : vector<20x32xf32>
      %c0_i32_30 = arith.constant 0 : i32
      %35 = arith.addi %arg16, %c0_i32_30 : i32
      %c0_31 = arith.constant 0 : index
      %36 = arith.index_cast %35 : i32 to index
      %c1 = arith.constant 1 : index
      %c0_32 = arith.constant 0 : index
      %37 = vector.load %arg1[%c0_31, %36, %c1, %c0_32] : memref<1x21x21x64xf32, #tpu.memory_space<vmem>>, vector<1x1x20x64xf32>
      %38 = vector.shape_cast %37 : vector<1x1x20x64xf32> to vector<20x64xf32>
      %39 = arith.truncf %38 : vector<20x64xf32> to vector<20x64xbf16>
      %c64 = arith.constant 64 : index
      %c0_33 = arith.constant 0 : index
      %40 = vector.load %arg2[%c64, %c0_33] : memref<256x32xbf16, #tpu.memory_space<vmem>>, vector<64x32xbf16>
      %cst_34 = arith.constant dense<0.000000e+00> : vector<20x32xf32>
      %41 = tpu.matmul %39, %40, %cst_34 {dimension_numbers = #tpu.dot_dimension_numbers<[1], [0], [0], [1], [0, 0, 1, 1], [], []>} : vector<20x64xbf16>, vector<64x32xbf16>, vector<20x32xf32> -> vector<20x32xf32>
      %42 = arith.addf %34, %41 : vector<20x32xf32>
      %c1_i32_35 = arith.constant 1 : i32
      %43 = arith.addi %arg16, %c1_i32_35 : i32
      %c0_36 = arith.constant 0 : index
      %44 = arith.index_cast %43 : i32 to index
      %c0_37 = arith.constant 0 : index
      %c0_38 = arith.constant 0 : index
      %45 = vector.load %arg1[%c0_36, %44, %c0_37, %c0_38] : memref<1x21x21x64xf32, #tpu.memory_space<vmem>>, vector<1x1x20x64xf32>
      %46 = vector.shape_cast %45 : vector<1x1x20x64xf32> to vector<20x64xf32>
      %47 = arith.truncf %46 : vector<20x64xf32> to vector<20x64xbf16>
      %c128 = arith.constant 128 : index
      %c0_39 = arith.constant 0 : index
      %48 = vector.load %arg2[%c128, %c0_39] : memref<256x32xbf16, #tpu.memory_space<vmem>>, vector<64x32xbf16>
      %cst_40 = arith.constant dense<0.000000e+00> : vector<20x32xf32>
      %49 = tpu.matmul %47, %48, %cst_40 {dimension_numbers = #tpu.dot_dimension_numbers<[1], [0], [0], [1], [0, 0, 1, 1], [], []>} : vector<20x64xbf16>, vector<64x32xbf16>, vector<20x32xf32> -> vector<20x32xf32>
      %50 = arith.addf %42, %49 : vector<20x32xf32>
      %c1_i32_41 = arith.constant 1 : i32
      %51 = arith.addi %arg16, %c1_i32_41 : i32
      %c0_42 = arith.constant 0 : index
      %52 = arith.index_cast %51 : i32 to index
      %c1_43 = arith.constant 1 : index
      %c0_44 = arith.constant 0 : index
      %53 = vector.load %arg1[%c0_42, %52, %c1_43, %c0_44] : memref<1x21x21x64xf32, #tpu.memory_space<vmem>>, vector<1x1x20x64xf32>
      %54 = vector.shape_cast %53 : vector<1x1x20x64xf32> to vector<20x64xf32>
      %55 = arith.truncf %54 : vector<20x64xf32> to vector<20x64xbf16>
      %c192 = arith.constant 192 : index
      %c0_45 = arith.constant 0 : index
      %56 = vector.load %arg2[%c192, %c0_45] : memref<256x32xbf16, #tpu.memory_space<vmem>>, vector<64x32xbf16>
      %cst_46 = arith.constant dense<0.000000e+00> : vector<20x32xf32>
      %57 = tpu.matmul %55, %56, %cst_46 {dimension_numbers = #tpu.dot_dimension_numbers<[1], [0], [0], [1], [0, 0, 1, 1], [], []>} : vector<20x64xbf16>, vector<64x32xbf16>, vector<20x32xf32> -> vector<20x32xf32>
      %58 = arith.addf %50, %57 : vector<20x32xf32>
      %c0_47 = arith.constant 0 : index
      %c0_48 = arith.constant 0 : index
      %59 = vector.load %arg3[%c0_47, %c0_48] : memref<1x32xf32, #tpu.memory_space<vmem>>, vector<1x32xf32>
      %60 = vector.broadcast %59 : vector<1x32xf32> to vector<20x32xf32>
      %61 = arith.addf %58, %60 : vector<20x32xf32>
      %cst_49 = arith.constant 0.000000e+00 : f32
      %62 = vector.broadcast %cst_49 : f32 to vector<20x32xf32>
      %63 = arith.maximumf %61, %62 : vector<20x32xf32>
      %64 = arith.index_cast %arg16 : i32 to index
      %c0_50 = arith.constant 0 : index
      %c0_51 = arith.constant 0 : index
      %65 = vector.load %arg13[%64, %c0_50, %c0_51] : memref<20x20x32xf32, #tpu.memory_space<vmem>>, vector<1x20x32xf32>
      %66 = vector.shape_cast %65 : vector<1x20x32xf32> to vector<20x32xf32>
      %67 = vector.shape_cast %63 : vector<20x32xf32> to vector<1x20x32xf32>
      tpu.vector_store %arg13[%64, %c0_50, %c0_51], %67 {strides = array<i32>} : memref<20x20x32xf32, #tpu.memory_space<vmem>>, vector<1x20x32xf32>,
    }
    %c20_i32_0 = arith.constant 20 : i32
    %c0_i32_1 = arith.constant 0 : i32
    %c9_i32 = arith.constant 9 : i32
    %1 = arith.addi %c0_i32_1, %c9_i32 : i32
    %c1_i32_2 = arith.constant 1 : i32
    scf.for %arg16 = %c0_i32_1 to %1 step %c1_i32_2  : i32 {
      %cst_22 = arith.constant 0.000000e+00 : f32
      %26 = vector.broadcast %cst_22 : f32 to vector<9x64xf32>
      %c2_i32 = arith.constant 2 : i32
      %27 = arith.muli %c2_i32, %arg16 : i32
      %c0_i32_23 = arith.constant 0 : i32
      %28 = arith.addi %27, %c0_i32_23 : i32
      %29 = arith.index_cast %28 : i32 to index
      %c0_24 = arith.constant 0 : index
      %c0_25 = arith.constant 0 : index
      %30 = tpu.strided_load %arg13[%29, %c0_24, %c0_25] {strides = array<i32: 1, 2, 1>} : memref<20x20x32xf32, #tpu.memory_space<vmem>>, vector<1x9x32xf32>
      %31 = vector.shape_cast %30 : vector<1x9x32xf32> to vector<9x32xf32>
      %32 = arith.truncf %31 : vector<9x32xf32> to vector<9x32xbf16>
      %c0_26 = arith.constant 0 : index
      %c0_27 = arith.constant 0 : index
      %33 = vector.load %arg4[%c0_26, %c0_27] : memref<512x64xbf16, #tpu.memory_space<vmem>>, vector<32x64xbf16>
      %cst_28 = arith.constant dense<0.000000e+00> : vector<9x64xf32>
      %34 = tpu.matmul %32, %33, %cst_28 {dimension_numbers = #tpu.dot_dimension_numbers<[1], [0], [0], [1], [0, 0, 1, 1], [], []>} : vector<9x32xbf16>, vector<32x64xbf16>, vector<9x64xf32> -> vector<9x64xf32>
      %35 = arith.addf %26, %34 : vector<9x64xf32>
      %36 = arith.index_cast %28 : i32 to index
      %c1 = arith.constant 1 : index
      %c0_29 = arith.constant 0 : index
      %37 = tpu.strided_load %arg13[%36, %c1, %c0_29] {strides = array<i32: 1, 2, 1>} : memref<20x20x32xf32, #tpu.memory_space<vmem>>, vector<1x9x32xf32>
      %38 = vector.shape_cast %37 : vector<1x9x32xf32> to vector<9x32xf32>
      %39 = arith.truncf %38 : vector<9x32xf32> to vector<9x32xbf16>
      %c32 = arith.constant 32 : index
      %c0_30 = arith.constant 0 : index
      %40 = vector.load %arg4[%c32, %c0_30] : memref<512x64xbf16, #tpu.memory_space<vmem>>, vector<32x64xbf16>
      %cst_31 = arith.constant dense<0.000000e+00> : vector<9x64xf32>
      %41 = tpu.matmul %39, %40, %cst_31 {dimension_numbers = #tpu.dot_dimension_numbers<[1], [0], [0], [1], [0, 0, 1, 1], [], []>} : vector<9x32xbf16>, vector<32x64xbf16>, vector<9x64xf32> -> vector<9x64xf32>
      %42 = arith.addf %35, %41 : vector<9x64xf32>
      %43 = arith.index_cast %28 : i32 to index
      %c2 = arith.constant 2 : index
      %c0_32 = arith.constant 0 : index
      %44 = tpu.strided_load %arg13[%43, %c2, %c0_32] {strides = array<i32: 1, 2, 1>} : memref<20x20x32xf32, #tpu.memory_space<vmem>>, vector<1x9x32xf32>
      %45 = vector.shape_cast %44 : vector<1x9x32xf32> to vector<9x32xf32>
      %46 = arith.truncf %45 : vector<9x32xf32> to vector<9x32xbf16>
      %c64 = arith.constant 64 : index
      %c0_33 = arith.constant 0 : index
      %47 = vector.load %arg4[%c64, %c0_33] : memref<512x64xbf16, #tpu.memory_space<vmem>>, vector<32x64xbf16>
      %cst_34 = arith.constant dense<0.000000e+00> : vector<9x64xf32>
      %48 = tpu.matmul %46, %47, %cst_34 {dimension_numbers = #tpu.dot_dimension_numbers<[1], [0], [0], [1], [0, 0, 1, 1], [], []>} : vector<9x32xbf16>, vector<32x64xbf16>, vector<9x64xf32> -> vector<9x64xf32>
      %49 = arith.addf %42, %48 : vector<9x64xf32>
      %50 = arith.index_cast %28 : i32 to index
      %c3 = arith.constant 3 : index
      %c0_35 = arith.constant 0 : index
      %51 = tpu.strided_load %arg13[%50, %c3, %c0_35] {strides = array<i32: 1, 2, 1>} : memref<20x20x32xf32, #tpu.memory_space<vmem>>, vector<1x9x32xf32>
      %52 = vector.shape_cast %51 : vector<1x9x32xf32> to vector<9x32xf32>
      %53 = arith.truncf %52 : vector<9x32xf32> to vector<9x32xbf16>
      %c96 = arith.constant 96 : index
      %c0_36 = arith.constant 0 : index
      %54 = vector.load %arg4[%c96, %c0_36] : memref<512x64xbf16, #tpu.memory_space<vmem>>, vector<32x64xbf16>
      %cst_37 = arith.constant dense<0.000000e+00> : vector<9x64xf32>
      %55 = tpu.matmul %53, %54, %cst_37 {dimension_numbers = #tpu.dot_dimension_numbers<[1], [0], [0], [1], [0, 0, 1, 1], [], []>} : vector<9x32xbf16>, vector<32x64xbf16>, vector<9x64xf32> -> vector<9x64xf32>
      %56 = arith.addf %49, %55 : vector<9x64xf32>
      %c2_i32_38 = arith.constant 2 : i32
      %57 = arith.muli %c2_i32_38, %arg16 : i32
      %c1_i32_39 = arith.constant 1 : i32
      %58 = arith.addi %57, %c1_i32_39 : i32
      %59 = arith.index_cast %58 : i32 to index
      %c0_40 = arith.constant 0 : index
      %c0_41 = arith.constant 0 : index
      %60 = tpu.strided_load %arg13[%59, %c0_40, %c0_41] {strides = array<i32: 1, 2, 1>} : memref<20x20x32xf32, #tpu.memory_space<vmem>>, vector<1x9x32xf32>
      %61 = vector.shape_cast %60 : vector<1x9x32xf32> to vector<9x32xf32>
      %62 = arith.truncf %61 : vector<9x32xf32> to vector<9x32xbf16>
      %c128 = arith.constant 128 : index
      %c0_42 = arith.constant 0 : index
      %63 = vector.load %arg4[%c128, %c0_42] : memref<512x64xbf16, #tpu.memory_space<vmem>>, vector<32x64xbf16>
      %cst_43 = arith.constant dense<0.000000e+00> : vector<9x64xf32>
      %64 = tpu.matmul %62, %63, %cst_43 {dimension_numbers = #tpu.dot_dimension_numbers<[1], [0], [0], [1], [0, 0, 1, 1], [], []>} : vector<9x32xbf16>, vector<32x64xbf16>, vector<9x64xf32> -> vector<9x64xf32>
      %65 = arith.addf %56, %64 : vector<9x64xf32>
      %66 = arith.index_cast %58 : i32 to index
      %c1_44 = arith.constant 1 : index
      %c0_45 = arith.constant 0 : index
      %67 = tpu.strided_load %arg13[%66, %c1_44, %c0_45] {strides = array<i32: 1, 2, 1>} : memref<20x20x32xf32, #tpu.memory_space<vmem>>, vector<1x9x32xf32>
      %68 = vector.shape_cast %67 : vector<1x9x32xf32> to vector<9x32xf32>
      %69 = arith.truncf %68 : vector<9x32xf32> to vector<9x32xbf16>
      %c160 = arith.constant 160 : index
      %c0_46 = arith.constant 0 : index
      %70 = vector.load %arg4[%c160, %c0_46] : memref<512x64xbf16, #tpu.memory_space<vmem>>, vector<32x64xbf16>
      %cst_47 = arith.constant dense<0.000000e+00> : vector<9x64xf32>
      %71 = tpu.matmul %69, %70, %cst_47 {dimension_numbers = #tpu.dot_dimension_numbers<[1], [0], [0], [1], [0, 0, 1, 1], [], []>} : vector<9x32xbf16>, vector<32x64xbf16>, vector<9x64xf32> -> vector<9x64xf32>
      %72 = arith.addf %65, %71 : vector<9x64xf32>
      %73 = arith.index_cast %58 : i32 to index
      %c2_48 = arith.constant 2 : index
      %c0_49 = arith.constant 0 : index
      %74 = tpu.strided_load %arg13[%73, %c2_48, %c0_49] {strides = array<i32: 1, 2, 1>} : memref<20x20x32xf32, #tpu.memory_space<vmem>>, vector<1x9x32xf32>
      %75 = vector.shape_cast %74 : vector<1x9x32xf32> to vector<9x32xf32>
      %76 = arith.truncf %75 : vector<9x32xf32> to vector<9x32xbf16>
      %c192 = arith.constant 192 : index
      %c0_50 = arith.constant 0 : index
      %77 = vector.load %arg4[%c192, %c0_50] : memref<512x64xbf16, #tpu.memory_space<vmem>>, vector<32x64xbf16>
      %cst_51 = arith.constant dense<0.000000e+00> : vector<9x64xf32>
      %78 = tpu.matmul %76, %77, %cst_51 {dimension_numbers = #tpu.dot_dimension_numbers<[1], [0], [0], [1], [0, 0, 1, 1], [], []>} : vector<9x32xbf16>, vector<32x64xbf16>, vector<9x64xf32> -> vector<9x64xf32>
      %79 = arith.addf %72, %78 : vector<9x64xf32>
      %80 = arith.index_cast %58 : i32 to index
      %c3_52 = arith.constant 3 : index
      %c0_53 = arith.constant 0 : index
      %81 = tpu.strided_load %arg13[%80, %c3_52, %c0_53] {strides = array<i32: 1, 2, 1>} : memref<20x20x32xf32, #tpu.memory_space<vmem>>, vector<1x9x32xf32>
      %82 = vector.shape_cast %81 : vector<1x9x32xf32> to vector<9x32xf32>
      %83 = arith.truncf %82 : vector<9x32xf32> to vector<9x32xbf16>
      %c224 = arith.constant 224 : index
      %c0_54 = arith.constant 0 : index
      %84 = vector.load %arg4[%c224, %c0_54] : memref<512x64xbf16, #tpu.memory_space<vmem>>, vector<32x64xbf16>
      %cst_55 = arith.constant dense<0.000000e+00> : vector<9x64xf32>
      %85 = tpu.matmul %83, %84, %cst_55 {dimension_numbers = #tpu.dot_dimension_numbers<[1], [0], [0], [1], [0, 0, 1, 1], [], []>} : vector<9x32xbf16>, vector<32x64xbf16>, vector<9x64xf32> -> vector<9x64xf32>
      %86 = arith.addf %79, %85 : vector<9x64xf32>
      %c2_i32_56 = arith.constant 2 : i32
      %87 = arith.muli %c2_i32_56, %arg16 : i32
      %c2_i32_57 = arith.constant 2 : i32
      %88 = arith.addi %87, %c2_i32_57 : i32
      %89 = arith.index_cast %88 : i32 to index
      %c0_58 = arith.constant 0 : index
      %c0_59 = arith.constant 0 : index
      %90 = tpu.strided_load %arg13[%89, %c0_58, %c0_59] {strides = array<i32: 1, 2, 1>} : memref<20x20x32xf32, #tpu.memory_space<vmem>>, vector<1x9x32xf32>
      %91 = vector.shape_cast %90 : vector<1x9x32xf32> to vector<9x32xf32>
      %92 = arith.truncf %91 : vector<9x32xf32> to vector<9x32xbf16>
      %c256 = arith.constant 256 : index
      %c0_60 = arith.constant 0 : index
      %93 = vector.load %arg4[%c256, %c0_60] : memref<512x64xbf16, #tpu.memory_space<vmem>>, vector<32x64xbf16>
      %cst_61 = arith.constant dense<0.000000e+00> : vector<9x64xf32>
      %94 = tpu.matmul %92, %93, %cst_61 {dimension_numbers = #tpu.dot_dimension_numbers<[1], [0], [0], [1], [0, 0, 1, 1], [], []>} : vector<9x32xbf16>, vector<32x64xbf16>, vector<9x64xf32> -> vector<9x64xf32>
      %95 = arith.addf %86, %94 : vector<9x64xf32>
      %96 = arith.index_cast %88 : i32 to index
      %c1_62 = arith.constant 1 : index
      %c0_63 = arith.constant 0 : index
      %97 = tpu.strided_load %arg13[%96, %c1_62, %c0_63] {strides = array<i32: 1, 2, 1>} : memref<20x20x32xf32, #tpu.memory_space<vmem>>, vector<1x9x32xf32>
      %98 = vector.shape_cast %97 : vector<1x9x32xf32> to vector<9x32xf32>
      %99 = arith.truncf %98 : vector<9x32xf32> to vector<9x32xbf16>
      %c288 = arith.constant 288 : index
      %c0_64 = arith.constant 0 : index
      %100 = vector.load %arg4[%c288, %c0_64] : memref<512x64xbf16, #tpu.memory_space<vmem>>, vector<32x64xbf16>
      %cst_65 = arith.constant dense<0.000000e+00> : vector<9x64xf32>
      %101 = tpu.matmul %99, %100, %cst_65 {dimension_numbers = #tpu.dot_dimension_numbers<[1], [0], [0], [1], [0, 0, 1, 1], [], []>} : vector<9x32xbf16>, vector<32x64xbf16>, vector<9x64xf32> -> vector<9x64xf32>
      %102 = arith.addf %95, %101 : vector<9x64xf32>
      %103 = arith.index_cast %88 : i32 to index
      %c2_66 = arith.constant 2 : index
      %c0_67 = arith.constant 0 : index
      %104 = tpu.strided_load %arg13[%103, %c2_66, %c0_67] {strides = array<i32: 1, 2, 1>} : memref<20x20x32xf32, #tpu.memory_space<vmem>>, vector<1x9x32xf32>
      %105 = vector.shape_cast %104 : vector<1x9x32xf32> to vector<9x32xf32>
      %106 = arith.truncf %105 : vector<9x32xf32> to vector<9x32xbf16>
      %c320 = arith.constant 320 : index
      %c0_68 = arith.constant 0 : index
      %107 = vector.load %arg4[%c320, %c0_68] : memref<512x64xbf16, #tpu.memory_space<vmem>>, vector<32x64xbf16>
      %cst_69 = arith.constant dense<0.000000e+00> : vector<9x64xf32>
      %108 = tpu.matmul %106, %107, %cst_69 {dimension_numbers = #tpu.dot_dimension_numbers<[1], [0], [0], [1], [0, 0, 1, 1], [], []>} : vector<9x32xbf16>, vector<32x64xbf16>, vector<9x64xf32> -> vector<9x64xf32>
      %109 = arith.addf %102, %108 : vector<9x64xf32>
      %110 = arith.index_cast %88 : i32 to index
      %c3_70 = arith.constant 3 : index
      %c0_71 = arith.constant 0 : index
      %111 = tpu.strided_load %arg13[%110, %c3_70, %c0_71] {strides = array<i32: 1, 2, 1>} : memref<20x20x32xf32, #tpu.memory_space<vmem>>, vector<1x9x32xf32>
      %112 = vector.shape_cast %111 : vector<1x9x32xf32> to vector<9x32xf32>
      %113 = arith.truncf %112 : vector<9x32xf32> to vector<9x32xbf16>
      %c352 = arith.constant 352 : index
      %c0_72 = arith.constant 0 : index
      %114 = vector.load %arg4[%c352, %c0_72] : memref<512x64xbf16, #tpu.memory_space<vmem>>, vector<32x64xbf16>
      %cst_73 = arith.constant dense<0.000000e+00> : vector<9x64xf32>
      %115 = tpu.matmul %113, %114, %cst_73 {dimension_numbers = #tpu.dot_dimension_numbers<[1], [0], [0], [1], [0, 0, 1, 1], [], []>} : vector<9x32xbf16>, vector<32x64xbf16>, vector<9x64xf32> -> vector<9x64xf32>
      %116 = arith.addf %109, %115 : vector<9x64xf32>
      %c2_i32_74 = arith.constant 2 : i32
      %117 = arith.muli %c2_i32_74, %arg16 : i32
      %c3_i32 = arith.constant 3 : i32
      %118 = arith.addi %117, %c3_i32 : i32
      %119 = arith.index_cast %118 : i32 to index
      %c0_75 = arith.constant 0 : index
      %c0_76 = arith.constant 0 : index
      %120 = tpu.strided_load %arg13[%119, %c0_75, %c0_76] {strides = array<i32: 1, 2, 1>} : memref<20x20x32xf32, #tpu.memory_space<vmem>>, vector<1x9x32xf32>
      %121 = vector.shape_cast %120 : vector<1x9x32xf32> to vector<9x32xf32>
      %122 = arith.truncf %121 : vector<9x32xf32> to vector<9x32xbf16>
      %c384 = arith.constant 384 : index
      %c0_77 = arith.constant 0 : index
      %123 = vector.load %arg4[%c384, %c0_77] : memref<512x64xbf16, #tpu.memory_space<vmem>>, vector<32x64xbf16>
      %cst_78 = arith.constant dense<0.000000e+00> : vector<9x64xf32>
      %124 = tpu.matmul %122, %123, %cst_78 {dimension_numbers = #tpu.dot_dimension_numbers<[1], [0], [0], [1], [0, 0, 1, 1], [], []>} : vector<9x32xbf16>, vector<32x64xbf16>, vector<9x64xf32> -> vector<9x64xf32>
      %125 = arith.addf %116, %124 : vector<9x64xf32>
      %126 = arith.index_cast %118 : i32 to index
      %c1_79 = arith.constant 1 : index
      %c0_80 = arith.constant 0 : index
      %127 = tpu.strided_load %arg13[%126, %c1_79, %c0_80] {strides = array<i32: 1, 2, 1>} : memref<20x20x32xf32, #tpu.memory_space<vmem>>, vector<1x9x32xf32>
      %128 = vector.shape_cast %127 : vector<1x9x32xf32> to vector<9x32xf32>
      %129 = arith.truncf %128 : vector<9x32xf32> to vector<9x32xbf16>
      %c416 = arith.constant 416 : index
      %c0_81 = arith.constant 0 : index
      %130 = vector.load %arg4[%c416, %c0_81] : memref<512x64xbf16, #tpu.memory_space<vmem>>, vector<32x64xbf16>
      %cst_82 = arith.constant dense<0.000000e+00> : vector<9x64xf32>
      %131 = tpu.matmul %129, %130, %cst_82 {dimension_numbers = #tpu.dot_dimension_numbers<[1], [0], [0], [1], [0, 0, 1, 1], [], []>} : vector<9x32xbf16>, vector<32x64xbf16>, vector<9x64xf32> -> vector<9x64xf32>
      %132 = arith.addf %125, %131 : vector<9x64xf32>
      %133 = arith.index_cast %118 : i32 to index
      %c2_83 = arith.constant 2 : index
      %c0_84 = arith.constant 0 : index
      %134 = tpu.strided_load %arg13[%133, %c2_83, %c0_84] {strides = array<i32: 1, 2, 1>} : memref<20x20x32xf32, #tpu.memory_space<vmem>>, vector<1x9x32xf32>
      %135 = vector.shape_cast %134 : vector<1x9x32xf32> to vector<9x32xf32>
      %136 = arith.truncf %135 : vector<9x32xf32> to vector<9x32xbf16>
      %c448 = arith.constant 448 : index
      %c0_85 = arith.constant 0 : index
      %137 = vector.load %arg4[%c448, %c0_85] : memref<512x64xbf16, #tpu.memory_space<vmem>>, vector<32x64xbf16>
      %cst_86 = arith.constant dense<0.000000e+00> : vector<9x64xf32>
      %138 = tpu.matmul %136, %137, %cst_86 {dimension_numbers = #tpu.dot_dimension_numbers<[1], [0], [0], [1], [0, 0, 1, 1], [], []>} : vector<9x32xbf16>, vector<32x64xbf16>, vector<9x64xf32> -> vector<9x64xf32>
      %139 = arith.addf %132, %138 : vector<9x64xf32>
      %140 = arith.index_cast %118 : i32 to index
      %c3_87 = arith.constant 3 : index
      %c0_88 = arith.constant 0 : index
      %141 = tpu.strided_load %arg13[%140, %c3_87, %c0_88] {strides = array<i32: 1, 2, 1>} : memref<20x20x32xf32, #tpu.memory_space<vmem>>, vector<1x9x32xf32>
      %142 = vector.shape_cast %141 : vector<1x9x32xf32> to vector<9x32xf32>
      %143 = arith.truncf %142 : vector<9x32xf32> to vector<9x32xbf16>
      %c480 = arith.constant 480 : index
      %c0_89 = arith.constant 0 : index
      %144 = vector.load %arg4[%c480, %c0_89] : memref<512x64xbf16, #tpu.memory_space<vmem>>, vector<32x64xbf16>
      %cst_90 = arith.constant dense<0.000000e+00> : vector<9x64xf32>
      %145 = tpu.matmul %143, %144, %cst_90 {dimension_numbers = #tpu.dot_dimension_numbers<[1], [0], [0], [1], [0, 0, 1, 1], [], []>} : vector<9x32xbf16>, vector<32x64xbf16>, vector<9x64xf32> -> vector<9x64xf32>
      %146 = arith.addf %139, %145 : vector<9x64xf32>
      %c0_91 = arith.constant 0 : index
      %c0_92 = arith.constant 0 : index
      %147 = vector.load %arg5[%c0_91, %c0_92] : memref<1x64xf32, #tpu.memory_space<vmem>>, vector<1x64xf32>
      %148 = vector.broadcast %147 : vector<1x64xf32> to vector<9x64xf32>
      %149 = arith.addf %146, %148 : vector<9x64xf32>
      %cst_93 = arith.constant 0.000000e+00 : f32
      %150 = vector.broadcast %cst_93 : f32 to vector<9x64xf32>
      %151 = arith.maximumf %149, %150 : vector<9x64xf32>
      %152 = arith.index_cast %arg16 : i32 to index
      %c0_94 = arith.constant 0 : index
      %c0_95 = arith.constant 0 : index
      %153 = vector.load %arg14[%152, %c0_94, %c0_95] : memref<9x9x64xf32, #tpu.memory_space<vmem>>, vector<1x9x64xf32>
      %154 = vector.shape_cast %153 : vector<1x9x64xf32> to vector<9x64xf32>
      %155 = vector.shape_cast %151 : vector<9x64xf32> to vector<1x9x64xf32>
      tpu.vector_store %arg14[%152, %c0_94, %c0_95], %155 {strides = array<i32>} : memref<9x9x64xf32, #tpu.memory_space<vmem>>, vector<1x9x64xf32>,
    }
    %c9_i32_3 = arith.constant 9 : i32
    %c0 = arith.constant 0 : index
    %c0_4 = arith.constant 0 : index
    %2 = vector.load %arg9[%c0, %c0_4] : memref<1x32xf32, #tpu.memory_space<vmem>>, vector<1x32xf32>
    %c0_5 = arith.constant 0 : index
    %c0_6 = arith.constant 0 : index
    %3 = vector.load %arg15[%c0_5, %c0_6] : memref<1x32xf32, #tpu.memory_space<vmem>>, vector<1x32xf32>
    tpu.vector_store %arg15[%c0_5, %c0_6], %2 {strides = array<i32>} : memref<1x32xf32, #tpu.memory_space<vmem>>, vector<1x32xf32>,
    %c0_i32_7 = arith.constant 0 : i32
    %c7_i32 = arith.constant 7 : i32
    %4 = arith.addi %c0_i32_7, %c7_i32 : i32
    %c1_i32_8 = arith.constant 1 : i32
    scf.for %arg16 = %c0_i32_7 to %4 step %c1_i32_8  : i32 {
      %cst_22 = arith.constant 0.000000e+00 : f32
      %26 = vector.broadcast %cst_22 : f32 to vector<7x64xf32>
      %c0_i32_23 = arith.constant 0 : i32
      %27 = arith.addi %arg16, %c0_i32_23 : i32
      %28 = arith.index_cast %27 : i32 to index
      %c0_24 = arith.constant 0 : index
      %c0_25 = arith.constant 0 : index
      %29 = vector.load %arg14[%28, %c0_24, %c0_25] : memref<9x9x64xf32, #tpu.memory_space<vmem>>, vector<1x7x64xf32>
      %30 = vector.shape_cast %29 : vector<1x7x64xf32> to vector<7x64xf32>
      %31 = arith.truncf %30 : vector<7x64xf32> to vector<7x64xbf16>
      %c0_26 = arith.constant 0 : index
      %c0_27 = arith.constant 0 : index
      %32 = vector.load %arg6[%c0_26, %c0_27] : memref<576x64xbf16, #tpu.memory_space<vmem>>, vector<64x64xbf16>
      %cst_28 = arith.constant dense<0.000000e+00> : vector<7x64xf32>
      %33 = tpu.matmul %31, %32, %cst_28 {dimension_numbers = #tpu.dot_dimension_numbers<[1], [0], [0], [1], [0, 0, 1, 1], [], []>} : vector<7x64xbf16>, vector<64x64xbf16>, vector<7x64xf32> -> vector<7x64xf32>
      %34 = arith.addf %26, %33 : vector<7x64xf32>
      %c0_i32_29 = arith.constant 0 : i32
      %35 = arith.addi %arg16, %c0_i32_29 : i32
      %36 = arith.index_cast %35 : i32 to index
      %c1 = arith.constant 1 : index
      %c0_30 = arith.constant 0 : index
      %37 = vector.load %arg14[%36, %c1, %c0_30] : memref<9x9x64xf32, #tpu.memory_space<vmem>>, vector<1x7x64xf32>
      %38 = vector.shape_cast %37 : vector<1x7x64xf32> to vector<7x64xf32>
      %39 = arith.truncf %38 : vector<7x64xf32> to vector<7x64xbf16>
      %c64 = arith.constant 64 : index
      %c0_31 = arith.constant 0 : index
      %40 = vector.load %arg6[%c64, %c0_31] : memref<576x64xbf16, #tpu.memory_space<vmem>>, vector<64x64xbf16>
      %cst_32 = arith.constant dense<0.000000e+00> : vector<7x64xf32>
      %41 = tpu.matmul %39, %40, %cst_32 {dimension_numbers = #tpu.dot_dimension_numbers<[1], [0], [0], [1], [0, 0, 1, 1], [], []>} : vector<7x64xbf16>, vector<64x64xbf16>, vector<7x64xf32> -> vector<7x64xf32>
      %42 = arith.addf %34, %41 : vector<7x64xf32>
      %c0_i32_33 = arith.constant 0 : i32
      %43 = arith.addi %arg16, %c0_i32_33 : i32
      %44 = arith.index_cast %43 : i32 to index
      %c2 = arith.constant 2 : index
      %c0_34 = arith.constant 0 : index
      %45 = vector.load %arg14[%44, %c2, %c0_34] : memref<9x9x64xf32, #tpu.memory_space<vmem>>, vector<1x7x64xf32>
      %46 = vector.shape_cast %45 : vector<1x7x64xf32> to vector<7x64xf32>
      %47 = arith.truncf %46 : vector<7x64xf32> to vector<7x64xbf16>
      %c128 = arith.constant 128 : index
      %c0_35 = arith.constant 0 : index
      %48 = vector.load %arg6[%c128, %c0_35] : memref<576x64xbf16, #tpu.memory_space<vmem>>, vector<64x64xbf16>
      %cst_36 = arith.constant dense<0.000000e+00> : vector<7x64xf32>
      %49 = tpu.matmul %47, %48, %cst_36 {dimension_numbers = #tpu.dot_dimension_numbers<[1], [0], [0], [1], [0, 0, 1, 1], [], []>} : vector<7x64xbf16>, vector<64x64xbf16>, vector<7x64xf32> -> vector<7x64xf32>
      %50 = arith.addf %42, %49 : vector<7x64xf32>
      %c1_i32_37 = arith.constant 1 : i32
      %51 = arith.addi %arg16, %c1_i32_37 : i32
      %52 = arith.index_cast %51 : i32 to index
      %c0_38 = arith.constant 0 : index
      %c0_39 = arith.constant 0 : index
      %53 = vector.load %arg14[%52, %c0_38, %c0_39] : memref<9x9x64xf32, #tpu.memory_space<vmem>>, vector<1x7x64xf32>
      %54 = vector.shape_cast %53 : vector<1x7x64xf32> to vector<7x64xf32>
      %55 = arith.truncf %54 : vector<7x64xf32> to vector<7x64xbf16>
      %c192 = arith.constant 192 : index
      %c0_40 = arith.constant 0 : index
      %56 = vector.load %arg6[%c192, %c0_40] : memref<576x64xbf16, #tpu.memory_space<vmem>>, vector<64x64xbf16>
      %cst_41 = arith.constant dense<0.000000e+00> : vector<7x64xf32>
      %57 = tpu.matmul %55, %56, %cst_41 {dimension_numbers = #tpu.dot_dimension_numbers<[1], [0], [0], [1], [0, 0, 1, 1], [], []>} : vector<7x64xbf16>, vector<64x64xbf16>, vector<7x64xf32> -> vector<7x64xf32>
      %58 = arith.addf %50, %57 : vector<7x64xf32>
      %c1_i32_42 = arith.constant 1 : i32
      %59 = arith.addi %arg16, %c1_i32_42 : i32
      %60 = arith.index_cast %59 : i32 to index
      %c1_43 = arith.constant 1 : index
      %c0_44 = arith.constant 0 : index
      %61 = vector.load %arg14[%60, %c1_43, %c0_44] : memref<9x9x64xf32, #tpu.memory_space<vmem>>, vector<1x7x64xf32>
      %62 = vector.shape_cast %61 : vector<1x7x64xf32> to vector<7x64xf32>
      %63 = arith.truncf %62 : vector<7x64xf32> to vector<7x64xbf16>
      %c256 = arith.constant 256 : index
      %c0_45 = arith.constant 0 : index
      %64 = vector.load %arg6[%c256, %c0_45] : memref<576x64xbf16, #tpu.memory_space<vmem>>, vector<64x64xbf16>
      %cst_46 = arith.constant dense<0.000000e+00> : vector<7x64xf32>
      %65 = tpu.matmul %63, %64, %cst_46 {dimension_numbers = #tpu.dot_dimension_numbers<[1], [0], [0], [1], [0, 0, 1, 1], [], []>} : vector<7x64xbf16>, vector<64x64xbf16>, vector<7x64xf32> -> vector<7x64xf32>
      %66 = arith.addf %58, %65 : vector<7x64xf32>
      %c1_i32_47 = arith.constant 1 : i32
      %67 = arith.addi %arg16, %c1_i32_47 : i32
      %68 = arith.index_cast %67 : i32 to index
      %c2_48 = arith.constant 2 : index
      %c0_49 = arith.constant 0 : index
      %69 = vector.load %arg14[%68, %c2_48, %c0_49] : memref<9x9x64xf32, #tpu.memory_space<vmem>>, vector<1x7x64xf32>
      %70 = vector.shape_cast %69 : vector<1x7x64xf32> to vector<7x64xf32>
      %71 = arith.truncf %70 : vector<7x64xf32> to vector<7x64xbf16>
      %c320 = arith.constant 320 : index
      %c0_50 = arith.constant 0 : index
      %72 = vector.load %arg6[%c320, %c0_50] : memref<576x64xbf16, #tpu.memory_space<vmem>>, vector<64x64xbf16>
      %cst_51 = arith.constant dense<0.000000e+00> : vector<7x64xf32>
      %73 = tpu.matmul %71, %72, %cst_51 {dimension_numbers = #tpu.dot_dimension_numbers<[1], [0], [0], [1], [0, 0, 1, 1], [], []>} : vector<7x64xbf16>, vector<64x64xbf16>, vector<7x64xf32> -> vector<7x64xf32>
      %74 = arith.addf %66, %73 : vector<7x64xf32>
      %c2_i32 = arith.constant 2 : i32
      %75 = arith.addi %arg16, %c2_i32 : i32
      %76 = arith.index_cast %75 : i32 to index
      %c0_52 = arith.constant 0 : index
      %c0_53 = arith.constant 0 : index
      %77 = vector.load %arg14[%76, %c0_52, %c0_53] : memref<9x9x64xf32, #tpu.memory_space<vmem>>, vector<1x7x64xf32>
      %78 = vector.shape_cast %77 : vector<1x7x64xf32> to vector<7x64xf32>
      %79 = arith.truncf %78 : vector<7x64xf32> to vector<7x64xbf16>
      %c384 = arith.constant 384 : index
      %c0_54 = arith.constant 0 : index
      %80 = vector.load %arg6[%c384, %c0_54] : memref<576x64xbf16, #tpu.memory_space<vmem>>, vector<64x64xbf16>
      %cst_55 = arith.constant dense<0.000000e+00> : vector<7x64xf32>
      %81 = tpu.matmul %79, %80, %cst_55 {dimension_numbers = #tpu.dot_dimension_numbers<[1], [0], [0], [1], [0, 0, 1, 1], [], []>} : vector<7x64xbf16>, vector<64x64xbf16>, vector<7x64xf32> -> vector<7x64xf32>
      %82 = arith.addf %74, %81 : vector<7x64xf32>
      %c2_i32_56 = arith.constant 2 : i32
      %83 = arith.addi %arg16, %c2_i32_56 : i32
      %84 = arith.index_cast %83 : i32 to index
      %c1_57 = arith.constant 1 : index
      %c0_58 = arith.constant 0 : index
      %85 = vector.load %arg14[%84, %c1_57, %c0_58] : memref<9x9x64xf32, #tpu.memory_space<vmem>>, vector<1x7x64xf32>
      %86 = vector.shape_cast %85 : vector<1x7x64xf32> to vector<7x64xf32>
      %87 = arith.truncf %86 : vector<7x64xf32> to vector<7x64xbf16>
      %c448 = arith.constant 448 : index
      %c0_59 = arith.constant 0 : index
      %88 = vector.load %arg6[%c448, %c0_59] : memref<576x64xbf16, #tpu.memory_space<vmem>>, vector<64x64xbf16>
      %cst_60 = arith.constant dense<0.000000e+00> : vector<7x64xf32>
      %89 = tpu.matmul %87, %88, %cst_60 {dimension_numbers = #tpu.dot_dimension_numbers<[1], [0], [0], [1], [0, 0, 1, 1], [], []>} : vector<7x64xbf16>, vector<64x64xbf16>, vector<7x64xf32> -> vector<7x64xf32>
      %90 = arith.addf %82, %89 : vector<7x64xf32>
      %c2_i32_61 = arith.constant 2 : i32
      %91 = arith.addi %arg16, %c2_i32_61 : i32
      %92 = arith.index_cast %91 : i32 to index
      %c2_62 = arith.constant 2 : index
      %c0_63 = arith.constant 0 : index
      %93 = vector.load %arg14[%92, %c2_62, %c0_63] : memref<9x9x64xf32, #tpu.memory_space<vmem>>, vector<1x7x64xf32>
      %94 = vector.shape_cast %93 : vector<1x7x64xf32> to vector<7x64xf32>
      %95 = arith.truncf %94 : vector<7x64xf32> to vector<7x64xbf16>
      %c512 = arith.constant 512 : index
      %c0_64 = arith.constant 0 : index
      %96 = vector.load %arg6[%c512, %c0_64] : memref<576x64xbf16, #tpu.memory_space<vmem>>, vector<64x64xbf16>
      %cst_65 = arith.constant dense<0.000000e+00> : vector<7x64xf32>
      %97 = tpu.matmul %95, %96, %cst_65 {dimension_numbers = #tpu.dot_dimension_numbers<[1], [0], [0], [1], [0, 0, 1, 1], [], []>} : vector<7x64xbf16>, vector<64x64xbf16>, vector<7x64xf32> -> vector<7x64xf32>
      %98 = arith.addf %90, %97 : vector<7x64xf32>
      %c0_66 = arith.constant 0 : index
      %c0_67 = arith.constant 0 : index
      %99 = vector.load %arg7[%c0_66, %c0_67] : memref<1x64xf32, #tpu.memory_space<vmem>>, vector<1x64xf32>
      %100 = vector.broadcast %99 : vector<1x64xf32> to vector<7x64xf32>
      %101 = arith.addf %98, %100 : vector<7x64xf32>
      %cst_68 = arith.constant 0.000000e+00 : f32
      %102 = vector.broadcast %cst_68 : f32 to vector<7x64xf32>
      %103 = arith.maximumf %101, %102 : vector<7x64xf32>
      %cst_69 = arith.constant 0.000000e+00 : f32
      %104 = vector.broadcast %cst_69 : f32 to vector<1x32xf32>
      %c7_i32_70 = arith.constant 7 : i32
      %105 = arith.muli %arg16, %c7_i32_70 : i32
      %c0_i32_71 = arith.constant 0 : i32
      %106 = arith.addi %105, %c0_i32_71 : i32
      %c64_i32 = arith.constant 64 : i32
      %107 = arith.muli %106, %c64_i32 : i32
      %108 = tpu.assume_multiple %107, 64 : i32
      %109 = vector.extract_strided_slice %103 {offsets = [0, 0], sizes = [1, 64], strides = [1, 1]} : vector<7x64xf32> to vector<1x64xf32>
      %110 = arith.truncf %109 : vector<1x64xf32> to vector<1x64xbf16>
      %111 = arith.index_cast %108 : i32 to index
      %c0_72 = arith.constant 0 : index
      %112 = vector.load %arg8[%111, %c0_72] : memref<3136x32xbf16, #tpu.memory_space<vmem>>, vector<64x32xbf16>
      %cst_73 = arith.constant dense<0.000000e+00> : vector<1x32xf32>
      %113 = tpu.matmul %110, %112, %cst_73 {dimension_numbers = #tpu.dot_dimension_numbers<[1], [0], [0], [1], [0, 0, 1, 1], [], []>} : vector<1x64xbf16>, vector<64x32xbf16>, vector<1x32xf32> -> vector<1x32xf32>
      %114 = arith.addf %104, %113 : vector<1x32xf32>
      %c7_i32_74 = arith.constant 7 : i32
      %115 = arith.muli %arg16, %c7_i32_74 : i32
      %c1_i32_75 = arith.constant 1 : i32
      %116 = arith.addi %115, %c1_i32_75 : i32
      %c64_i32_76 = arith.constant 64 : i32
      %117 = arith.muli %116, %c64_i32_76 : i32
      %118 = tpu.assume_multiple %117, 64 : i32
      %119 = vector.extract_strided_slice %103 {offsets = [1, 0], sizes = [1, 64], strides = [1, 1]} : vector<7x64xf32> to vector<1x64xf32>
      %120 = arith.truncf %119 : vector<1x64xf32> to vector<1x64xbf16>
      %121 = arith.index_cast %118 : i32 to index
      %c0_77 = arith.constant 0 : index
      %122 = vector.load %arg8[%121, %c0_77] : memref<3136x32xbf16, #tpu.memory_space<vmem>>, vector<64x32xbf16>
      %cst_78 = arith.constant dense<0.000000e+00> : vector<1x32xf32>
      %123 = tpu.matmul %120, %122, %cst_78 {dimension_numbers = #tpu.dot_dimension_numbers<[1], [0], [0], [1], [0, 0, 1, 1], [], []>} : vector<1x64xbf16>, vector<64x32xbf16>, vector<1x32xf32> -> vector<1x32xf32>
      %124 = arith.addf %114, %123 : vector<1x32xf32>
      %c7_i32_79 = arith.constant 7 : i32
      %125 = arith.muli %arg16, %c7_i32_79 : i32
      %c2_i32_80 = arith.constant 2 : i32
      %126 = arith.addi %125, %c2_i32_80 : i32
      %c64_i32_81 = arith.constant 64 : i32
      %127 = arith.muli %126, %c64_i32_81 : i32
      %128 = tpu.assume_multiple %127, 64 : i32
      %129 = vector.extract_strided_slice %103 {offsets = [2, 0], sizes = [1, 64], strides = [1, 1]} : vector<7x64xf32> to vector<1x64xf32>
      %130 = arith.truncf %129 : vector<1x64xf32> to vector<1x64xbf16>
      %131 = arith.index_cast %128 : i32 to index
      %c0_82 = arith.constant 0 : index
      %132 = vector.load %arg8[%131, %c0_82] : memref<3136x32xbf16, #tpu.memory_space<vmem>>, vector<64x32xbf16>
      %cst_83 = arith.constant dense<0.000000e+00> : vector<1x32xf32>
      %133 = tpu.matmul %130, %132, %cst_83 {dimension_numbers = #tpu.dot_dimension_numbers<[1], [0], [0], [1], [0, 0, 1, 1], [], []>} : vector<1x64xbf16>, vector<64x32xbf16>, vector<1x32xf32> -> vector<1x32xf32>
      %134 = arith.addf %124, %133 : vector<1x32xf32>
      %c7_i32_84 = arith.constant 7 : i32
      %135 = arith.muli %arg16, %c7_i32_84 : i32
      %c3_i32 = arith.constant 3 : i32
      %136 = arith.addi %135, %c3_i32 : i32
      %c64_i32_85 = arith.constant 64 : i32
      %137 = arith.muli %136, %c64_i32_85 : i32
      %138 = tpu.assume_multiple %137, 64 : i32
      %139 = vector.extract_strided_slice %103 {offsets = [3, 0], sizes = [1, 64], strides = [1, 1]} : vector<7x64xf32> to vector<1x64xf32>
      %140 = arith.truncf %139 : vector<1x64xf32> to vector<1x64xbf16>
      %141 = arith.index_cast %138 : i32 to index
      %c0_86 = arith.constant 0 : index
      %142 = vector.load %arg8[%141, %c0_86] : memref<3136x32xbf16, #tpu.memory_space<vmem>>, vector<64x32xbf16>
      %cst_87 = arith.constant dense<0.000000e+00> : vector<1x32xf32>
      %143 = tpu.matmul %140, %142, %cst_87 {dimension_numbers = #tpu.dot_dimension_numbers<[1], [0], [0], [1], [0, 0, 1, 1], [], []>} : vector<1x64xbf16>, vector<64x32xbf16>, vector<1x32xf32> -> vector<1x32xf32>
      %144 = arith.addf %134, %143 : vector<1x32xf32>
      %c7_i32_88 = arith.constant 7 : i32
      %145 = arith.muli %arg16, %c7_i32_88 : i32
      %c4_i32 = arith.constant 4 : i32
      %146 = arith.addi %145, %c4_i32 : i32
      %c64_i32_89 = arith.constant 64 : i32
      %147 = arith.muli %146, %c64_i32_89 : i32
      %148 = tpu.assume_multiple %147, 64 : i32
      %149 = vector.extract_strided_slice %103 {offsets = [4, 0], sizes = [1, 64], strides = [1, 1]} : vector<7x64xf32> to vector<1x64xf32>
      %150 = arith.truncf %149 : vector<1x64xf32> to vector<1x64xbf16>
      %151 = arith.index_cast %148 : i32 to index
      %c0_90 = arith.constant 0 : index
      %152 = vector.load %arg8[%151, %c0_90] : memref<3136x32xbf16, #tpu.memory_space<vmem>>, vector<64x32xbf16>
      %cst_91 = arith.constant dense<0.000000e+00> : vector<1x32xf32>
      %153 = tpu.matmul %150, %152, %cst_91 {dimension_numbers = #tpu.dot_dimension_numbers<[1], [0], [0], [1], [0, 0, 1, 1], [], []>} : vector<1x64xbf16>, vector<64x32xbf16>, vector<1x32xf32> -> vector<1x32xf32>
      %154 = arith.addf %144, %153 : vector<1x32xf32>
      %c7_i32_92 = arith.constant 7 : i32
      %155 = arith.muli %arg16, %c7_i32_92 : i32
      %c5_i32 = arith.constant 5 : i32
      %156 = arith.addi %155, %c5_i32 : i32
      %c64_i32_93 = arith.constant 64 : i32
      %157 = arith.muli %156, %c64_i32_93 : i32
      %158 = tpu.assume_multiple %157, 64 : i32
      %159 = vector.extract_strided_slice %103 {offsets = [5, 0], sizes = [1, 64], strides = [1, 1]} : vector<7x64xf32> to vector<1x64xf32>
      %160 = arith.truncf %159 : vector<1x64xf32> to vector<1x64xbf16>
      %161 = arith.index_cast %158 : i32 to index
      %c0_94 = arith.constant 0 : index
      %162 = vector.load %arg8[%161, %c0_94] : memref<3136x32xbf16, #tpu.memory_space<vmem>>, vector<64x32xbf16>
      %cst_95 = arith.constant dense<0.000000e+00> : vector<1x32xf32>
      %163 = tpu.matmul %160, %162, %cst_95 {dimension_numbers = #tpu.dot_dimension_numbers<[1], [0], [0], [1], [0, 0, 1, 1], [], []>} : vector<1x64xbf16>, vector<64x32xbf16>, vector<1x32xf32> -> vector<1x32xf32>
      %164 = arith.addf %154, %163 : vector<1x32xf32>
      %c7_i32_96 = arith.constant 7 : i32
      %165 = arith.muli %arg16, %c7_i32_96 : i32
      %c6_i32 = arith.constant 6 : i32
      %166 = arith.addi %165, %c6_i32 : i32
      %c64_i32_97 = arith.constant 64 : i32
      %167 = arith.muli %166, %c64_i32_97 : i32
      %168 = tpu.assume_multiple %167, 64 : i32
      %169 = vector.extract_strided_slice %103 {offsets = [6, 0], sizes = [1, 64], strides = [1, 1]} : vector<7x64xf32> to vector<1x64xf32>
      %170 = arith.truncf %169 : vector<1x64xf32> to vector<1x64xbf16>
      %171 = arith.index_cast %168 : i32 to index
      %c0_98 = arith.constant 0 : index
      %172 = vector.load %arg8[%171, %c0_98] : memref<3136x32xbf16, #tpu.memory_space<vmem>>, vector<64x32xbf16>
      %cst_99 = arith.constant dense<0.000000e+00> : vector<1x32xf32>
      %173 = tpu.matmul %170, %172, %cst_99 {dimension_numbers = #tpu.dot_dimension_numbers<[1], [0], [0], [1], [0, 0, 1, 1], [], []>} : vector<1x64xbf16>, vector<64x32xbf16>, vector<1x32xf32> -> vector<1x32xf32>
      %174 = arith.addf %164, %173 : vector<1x32xf32>
      %c0_100 = arith.constant 0 : index
      %c0_101 = arith.constant 0 : index
      %175 = vector.load %arg15[%c0_100, %c0_101] : memref<1x32xf32, #tpu.memory_space<vmem>>, vector<1x32xf32>
      %176 = arith.addf %175, %174 : vector<1x32xf32>
      %c0_102 = arith.constant 0 : index
      %c0_103 = arith.constant 0 : index
      %177 = vector.load %arg15[%c0_102, %c0_103] : memref<1x32xf32, #tpu.memory_space<vmem>>, vector<1x32xf32>
      tpu.vector_store %arg15[%c0_102, %c0_103], %176 {strides = array<i32>} : memref<1x32xf32, #tpu.memory_space<vmem>>, vector<1x32xf32>,
    }
    %c7_i32_9 = arith.constant 7 : i32
    %c0_10 = arith.constant 0 : index
    %c0_11 = arith.constant 0 : index
    %5 = vector.load %arg15[%c0_10, %c0_11] : memref<1x32xf32, #tpu.memory_space<vmem>>, vector<1x32xf32>
    %cst = arith.constant 0.000000e+00 : f32
    %6 = vector.broadcast %cst : f32 to vector<1x32xf32>
    %7 = arith.maximumf %5, %6 : vector<1x32xf32>
    %8 = arith.truncf %7 : vector<1x32xf32> to vector<1x32xbf16>
    %c0_12 = arith.constant 0 : index
    %c0_13 = arith.constant 0 : index
    %9 = vector.load %arg10[%c0_12, %c0_13] : memref<32x5xbf16, #tpu.memory_space<vmem>>, vector<32x5xbf16>
    %cst_14 = arith.constant dense<0.000000e+00> : vector<1x5xf32>
    %10 = tpu.matmul %8, %9, %cst_14 {dimension_numbers = #tpu.dot_dimension_numbers<[1], [0], [0], [1], [0, 0, 1, 1], [], []>} : vector<1x32xbf16>, vector<32x5xbf16>, vector<1x5xf32> -> vector<1x5xf32>
    %c0_15 = arith.constant 0 : index
    %c0_16 = arith.constant 0 : index
    %11 = vector.load %arg11[%c0_15, %c0_16] : memref<1x5xf32, #tpu.memory_space<vmem>>, vector<1x5xf32>
    %12 = arith.addf %10, %11 : vector<1x5xf32>
    %13 = vector.extract_strided_slice %12 {offsets = [0, 1], sizes = [1, 4], strides = [1, 1]} : vector<1x5xf32> to vector<1x4xf32>
    %14 = vector.extract_strided_slice %12 {offsets = [0, 0], sizes = [1, 1], strides = [1, 1]} : vector<1x5xf32> to vector<1x1xf32>
    %15 = vector.broadcast %14 : vector<1x1xf32> to vector<1x4xf32>
    %16 = arith.addf %15, %13 : vector<1x4xf32>
    %cst_17 = arith.constant dense<0.000000e+00> : vector<1xf32>
    %17 = vector.multi_reduction <add>, %13, %cst_17 [1] : vector<1x4xf32> to vector<1xf32>
    %18 = vector.shape_cast %17 : vector<1xf32> to vector<1x1xf32>
    %cst_18 = arith.constant 4.000000e+00 : f32
    %19 = vector.broadcast %cst_18 : f32 to vector<1x1xf32>
    %20 = arith.divf %18, %19 : vector<1x1xf32>
    %21 = vector.broadcast %20 : vector<1x1xf32> to vector<1x4xf32>
    %22 = arith.subf %16, %21 : vector<1x4xf32>
    %c0_19 = arith.constant 0 : index
    %c0_20 = arith.constant 0 : index
    %c0_21 = arith.constant 0 : index
    %23 = vector.load %arg12[%c0_19, %c0_20, %c0_21] : memref<1x1x4xf32, #tpu.memory_space<vmem>>, vector<1x1x4xf32>
    %24 = vector.shape_cast %23 : vector<1x1x4xf32> to vector<1x4xf32>
    %25 = vector.shape_cast %22 : vector<1x4xf32> to vector<1x1x4xf32>
    tpu.vector_store %arg12[%c0_19, %c0_20, %c0_21], %25 {strides = array<i32>} : memref<1x1x4xf32, #tpu.memory_space<vmem>>, vector<1x1x4xf32>,
    return
  }
  func.func @transform_0(%arg0: i32) -> (i32, i32, i32, i32) {
    %c0_i32 = arith.constant 0 : i32
    %c0_i32_0 = arith.constant 0 : i32
    %c0_i32_1 = arith.constant 0 : i32
    %c0_i32_2 = arith.constant 0 : i32
    return %arg0, %c0_i32, %c0_i32_0, %c0_i32_1 : i32, i32, i32, i32
  }
  func.func @transform_1(%arg0: i32) -> (i32, i32) {
    %c0_i32 = arith.constant 0 : i32
    %c0_i32_0 = arith.constant 0 : i32
    %c0_i32_1 = arith.constant 0 : i32
    return %c0_i32, %c0_i32_0 : i32, i32
  }
  func.func @transform_2(%arg0: i32) -> (i32, i32) {
    %c0_i32 = arith.constant 0 : i32
    %c0_i32_0 = arith.constant 0 : i32
    %c0_i32_1 = arith.constant 0 : i32
    return %c0_i32, %c0_i32_0 : i32, i32
  }
  func.func @transform_3(%arg0: i32) -> (i32, i32) {
    %c0_i32 = arith.constant 0 : i32
    %c0_i32_0 = arith.constant 0 : i32
    %c0_i32_1 = arith.constant 0 : i32
    return %c0_i32, %c0_i32_0 : i32, i32
  }
  func.func @transform_4(%arg0: i32) -> (i32, i32) {
    %c0_i32 = arith.constant 0 : i32
    %c0_i32_0 = arith.constant 0 : i32
    %c0_i32_1 = arith.constant 0 : i32
    return %c0_i32, %c0_i32_0 : i32, i32
  }
  func.func @transform_5(%arg0: i32) -> (i32, i32) {
    %c0_i32 = arith.constant 0 : i32
    %c0_i32_0 = arith.constant 0 : i32
    %c0_i32_1 = arith.constant 0 : i32
    return %c0_i32, %c0_i32_0 : i32, i32
  }
  func.func @transform_6(%arg0: i32) -> (i32, i32) {
    %c0_i32 = arith.constant 0 : i32
    %c0_i32_0 = arith.constant 0 : i32
    %c0_i32_1 = arith.constant 0 : i32
    return %c0_i32, %c0_i32_0 : i32, i32
  }
  func.func @transform_7(%arg0: i32) -> (i32, i32) {
    %c0_i32 = arith.constant 0 : i32
    %c0_i32_0 = arith.constant 0 : i32
    %c0_i32_1 = arith.constant 0 : i32
    return %c0_i32, %c0_i32_0 : i32, i32
  }
  func.func @transform_8(%arg0: i32) -> (i32, i32) {
    %c0_i32 = arith.constant 0 : i32
    %c0_i32_0 = arith.constant 0 : i32
    %c0_i32_1 = arith.constant 0 : i32
    return %c0_i32, %c0_i32_0 : i32, i32
  }
  func.func @transform_9(%arg0: i32) -> (i32, i32) {
    %c0_i32 = arith.constant 0 : i32
    %c0_i32_0 = arith.constant 0 : i32
    %c0_i32_1 = arith.constant 0 : i32
    return %c0_i32, %c0_i32_0 : i32, i32
  }
  func.func @transform_10(%arg0: i32) -> (i32, i32) {
    %c0_i32 = arith.constant 0 : i32
    %c0_i32_0 = arith.constant 0 : i32
    %c0_i32_1 = arith.constant 0 : i32
    return %c0_i32, %c0_i32_0 : i32, i32
  }
  func.func @transform_11(%arg0: i32) -> (i32, i32, i32) {
    %c0_i32 = arith.constant 0 : i32
    %c0_i32_0 = arith.constant 0 : i32
    %c0_i32_1 = arith.constant 0 : i32
    return %arg0, %c0_i32, %c0_i32_0 : i32, i32, i32
  }
}

</mosaic_0001>

<bundles_post_ra>
// kernel: dueling_q_forward.1
= control target key start
LH: loop header
LB: loop body
LE: loop exit
PB: predicated region body
PF: predicated region fallthrough
CT: control target
= control target key end

     0   :  { %s3927_s0 = inlined_call_operand.vmem [shape: f32[2,21,21,64], index: 0, kind: input, shape index: {}]   ;;  %s3928_s1 = inlined_call_operand.vmem [shape: bf16[256,32], index: 1, kind: input, shape index: {}]   ;;  %s3929_s2 = inlined_call_operand.vmem [shape: f32[1,32], index: 2, kind: input, shape index: {}]   ;;  %s3930_s3 = inlined_call_operand.vmem [shape: bf16[512,64], index: 3, kind: input, shape index: {}]   ;;  %s3931_s4 = inlined_call_operand.vmem [shape: f32[1,64], index: 4, kind: input, shape index: {}]   ;;  %s3932_s5 = inlined_call_operand.vmem [shape: bf16[576,64], index: 5, kind: input, shape index: {}]   ;;  %s3933_s6 = inlined_call_operand.vmem [shape: f32[1,64], index: 6, kind: input, shape index: {}]   ;;  %s3934_s7 = inlined_call_operand.vmem [shape: bf16[3136,32], index: 7, kind: input, shape index: {}]   ;;  %s3935_s8 = inlined_call_operand.vmem [shape: f32[1,32], index: 8, kind: input, shape index: {}]   ;;  %s3936_s9 = inlined_call_operand.vmem [shape: bf16[32,5], index: 9, kind: input, shape index: {}]   ;;  %s3937_s10 = inlined_call_operand.vmem [shape: f32[1,5], index: 10, kind: input, shape index: {}]   ;;  %s3938_s11 = inlined_call_operand.hbm [shape: f32[2,1,4], index: 11, kind: output, shape index: {}]  }
   0x1   :  { %3942 = sst [smem:[#allocation11_spill]] %s3927_s0 }
   0x2   :  { %3943 = sst [smem:[#allocation12_spill]] %s3928_s1 }
   0x3   :  { %3944 = sst [smem:[#allocation13_spill]] %s3929_s2 }
   0x4   :  { %3945 = sst [smem:[#allocation14_spill]] %s3930_s3 }
   0x5   :  { %3946 = sst [smem:[#allocation15_spill]] %s3931_s4 }
   0x6   :  { %3947 = sst [smem:[#allocation16_spill]] %s3932_s5 }
   0x7   :  { %3948 = sst [smem:[#allocation17_spill]] %s3935_s8 }
   0x8   :  { %16 = vsyncpa [#allocation6], 0 }
   0x9   :  { %18 = vsyncpa [#allocation6 + $0x1], 0  ;;  %s3346_s17 = smov 0   ;;  %s3348_s18 = smov 0  }
   0xa   :  { %s3350_s19 = smov 0   ;;  %s3352_s20 = smov 0  }
   0xb LB: > { %3949 = sst [smem:[#allocation8_spill]] %s3265_s19  ;;  %s3367_s21 = sadd.s32 4294967295, %s3269_s20   ;;  %s3269_s20 = sphi %s3352_s20, %s3968_s20   ;;  %s3265_s19 = sphi %s3350_s19, %s3965_s19   ;;  %s3261_s18 = sphi %s3348_s18, %s3967_s18   ;;  %s3257_s17 = sphi %s3346_s17, %s3966_s17  }
   0xc   : > { %s2417_s22 = sadd.s32 4294967294, %s3269_s20   ;;  %s3371_s23 = sadd.s32 1, %s3269_s20  }
   0xd   : > { %s267_s24 = sadd.s32 1, %s3265_s19  ;;  %s264_s25 = ssub.s32 %s3269_s20, %s3371_s23 }
   0xe   : > { %p277_p0 = scmp.ne.s32.totalorder %s3265_s19, %s3261_s18  ;;  %p265_p1 = scmp.eq.s32.totalorder %s264_s25, 0 }
   0xf   : > { %p278_p2 = scmp.eq.s32.totalorder %s3367_s21, 1  ;;  %p283_p3 = scmp.ne.s32.totalorder %s3261_s18, %s3257_s17 }
  0x10   : > { %p284_p4 = scmp.eq.s32.totalorder %s2417_s22, 1  ;;  %p2420_p7 = scmp.ge.s32.totalorder %s3269_s20, 1 }
  0x11   : > { %s3382_s26 = scalar_select %p265_p1, %s3265_s19, %s267_s24  }
  0x12   : > { %p3384_p5 = por %p278_p2, %p277_p0  ;;  %p3388_p6 = por %p284_p4, %p283_p3 }
  0x13   : > { %3950 = sst [smem:[#allocation9_spill]] %s3382_s26  ;;  %p340_p8 = scmp.lt.s32.totalorder %s3269_s20, 3 }
  0x15   : > { %p341_p9 = pnand %p2420_p7, %p340_p8 }
  0x17   : > { %344 = sbr.rel (%p341_p9) target bundleno = 1266 (0x4f2), region = 64 }
  0x1c   : > { %s3939_s29 = sand.u32 1, %s3261_s18   ;;  %p379_p10 = scmp.lt.s32.totalorder %s3367_s21, 1 }
  0x1d   : > { %s3953_s0 = sld [smem:[#allocation11_spill]]  ;;  %s3404_s16 = scalar_lea.vmem [#allocation5], %s3939_s29 }
  0x1e   : > { %s380_s30 = scalar_select %p379_p10, %s3367_s21, 1 }
  0x1f   : > { %s3406_s22 = smov 0  }
  0x20   : > { %s3121_s12 = smul.u32 504, %s380_s30 }
  0x23   : > { %s3400_s15 = scalar_lea.vmem %s3953_s0, %s3121_s12 }
  0x24   : > { %3954 = sst [smem:[#allocation10_spill]] %s3400_s15 }
  0x25 LB: >> { %s3955_s1 = sld [smem:[#allocation12_spill]]  ;;  %s3941_s26 = smul.u32 24, %s3273_s22  ;;  %vm443_vm0 = vcmask 523264   ;;  %vm658_vm1 = vcmask 261120   ;;  %vm661_vm2 = vcmask 257024   ;;  %s3273_s22 = sphi %s3406_s22, %s390_s22  }
  0x26   : >> { %s3956_s15 = sld [smem:[#allocation10_spill]] }
  0x27   : >> { %s3957_s2 = sld [smem:[#allocation13_spill]] }
  0x2b   : >> { %v2996_v0 = vld [vmem:[%s3955_s1 + $0x38] sm:$0xff]  ;;  %v2995_v4 = vld [vmem:[%s3955_s1 + $0x30] sm:$0xff]  ;;  %v2994_v8 = vld [vmem:[%s3955_s1 + $0x28] sm:$0xff] }
  0x2c   : >> { %v2992_v1 = vld [vmem:[%s3955_s1 + $0x18] sm:$0xff]  ;;  %454 = vmatpush.bf16.msra.mxu0 %v2996_v0  ;;  %v2991_v5 = vld [vmem:[%s3955_s1 + $0x10] sm:$0xff]  ;;  %v2990_v9 = vld [vmem:[%s3955_s1 + $0x8] sm:$0xff]  ;;  %s3445_s25 = scalar_lea.vmem %s3956_s15, %s3941_s26 }
  0x2d   : >> { %v3000_v2 = vld [vmem:[%s3955_s1 + $0x58] sm:$0xff]  ;;  %502 = vmatpush.bf16.msra.mxu1 %v2992_v1  ;;  %v2999_v6 = vld [vmem:[%s3955_s1 + $0x50] sm:$0xff]  ;;  %v2998_v10 = vld [vmem:[%s3955_s1 + $0x48] sm:$0xff] }
  0x2e   : >> { %v3004_v3 = vld [vmem:[%s3955_s1 + $0x78] sm:$0xff]  ;;  %566 = vmatpush.bf16.msra.mxu2 %v3000_v2  ;;  %v3003_v7 = vld [vmem:[%s3955_s1 + $0x70] sm:$0xff]  ;;  %v3002_v11 = vld [vmem:[%s3955_s1 + $0x68] sm:$0xff] }
  0x2f   : >> { %630 = vmatpush.bf16.msra.mxu3 %v3004_v3  ;;  %v2993_v12 = vld [vmem:[%s3955_s1 + $0x20] sm:$0xff]  ;;  %v407_v17 = vld [vmem:[%s3445_s25 + $0x9] sm:$0xff]  ;;  %v2458_v20 = vld [vmem:[%s3445_s25 + $0x18] sm:$0xff] }
  0x30   : >> { %455 = vmatpush.bf16.msra.mxu0 %v2995_v4  ;;  %v2989_v13 = vld [vmem:[%s3955_s1] sm:$0xff]  ;;  %v394_v19 = vld [vmem:[%s3445_s25 + $0x8] sm:$0xff]  ;;  %v408_v28 = vld [vmem:[%s3445_s25 + $0x11] sm:$0xf] }
  0x31   : >> { %503 = vmatpush.bf16.msra.mxu1 %v2991_v5  ;;  %v2997_v14 = vld [vmem:[%s3955_s1 + $0x40] sm:$0xff]  ;;  %v395_v29 = vld [vmem:[%s3445_s25 + $0x10] sm:$0xf]  ;;  %v2460_v30 = vld [vmem:[%s3445_s25 + $0x28] sm:$0xf]  ;;  %v410_v32 = vpack.c.bf16 %v408_v28, %v408_v28 }
  0x32   : >> { %567 = vmatpush.bf16.msra.mxu2 %v2999_v6  ;;  %v3001_v15 = vld [vmem:[%s3955_s1 + $0x60] sm:$0xff]  ;;  %v2481_v31 = vld [vmem:[%s3445_s25 + $0x29] sm:$0xf]  ;;  %v397_v33 = vpack.c.bf16 %v395_v29, %v395_v29  ;;  %v523_v34 = vpack.c.bf16 %v2460_v30, %v2460_v30 }
  0x33   : >> { %631 = vmatpush.bf16.msra.mxu3 %v3003_v7  ;;  %v406_v16 = vld [vmem:[%s3445_s25 + $0x1] sm:$0xff]  ;;  %v2479_v22 = vld [vmem:[%s3445_s25 + $0x19] sm:$0xff]  ;;  %v587_v35 = vpack.c.bf16 %v2481_v31, %v2481_v31 }
  0x34   : >> { %456 = vmatpush.bf16.msra.mxu0 %v2994_v8  ;;  %v393_v18 = vld [vmem:[%s3445_s25] sm:$0xff]  ;;  %v409_v24 = vpack.c.bf16 %v407_v17, %v406_v16 }
  0x35   : >> { %504 = vmatpush.bf16.msra.mxu1 %v2990_v9  ;;  %v2459_v21 = vld [vmem:[%s3445_s25 + $0x20] sm:$0xff]  ;;  %v396_v25 = vpack.c.bf16 %v394_v19, %v393_v18 }
  0x36   : >> { %568 = vmatpush.bf16.msra.mxu2 %v2998_v10  ;;  %v2480_v23 = vld [vmem:[%s3445_s25 + $0x21] sm:$0xff]  ;;  %v522_v26 = vpack.c.bf16 %v2459_v21, %v2458_v20  ;;  %v3188_v42 = vld [vmem:[%s3957_s2] ss:$0 sm:$0xff]  ;;  %s3958_s25 = smul.u32 24, %s3273_s22  ;;  %s390_s22 = sadd.s32 1, %s3273_s22  }
  0x37   : >> { %632 = vmatpush.bf16.msra.mxu3 %v3002_v11  ;;  %v586_v27 = vpack.c.bf16 %v2480_v23, %v2479_v22  ;;  %p387_p11 = scmp.ge.s32.totalorder %s390_s22, 20  }
  0x38   : >> { %457 = vmatpush.bf16.msra.mxu0 %v2993_v12  ;;  %s657_s13 = scalar_lea.vmem [#allocation2], %s3958_s25  ;;  %s3495_s29 = smov (%p387_p11), 0  }
  0x39   : >> { %505 = vmatpush.bf16.msra.mxu1 %v2989_v13 }
  0x3a   : >> { %569 = vmatpush.bf16.msra.mxu2 %v2997_v14 }
  0x3b   : >> { %633 = vmatpush.bf16.msra.mxu3 %v3001_v15  ;;  %2438 = vmatmul.msk.bf16.vlgmr.msra.gmra.mxu0 %vm443_vm0, %v409_v24 }
  0x3c   : >> { %2456 = vmatmul.msk.bf16.vlgmr.msra.gmra.mxu1 %vm443_vm0, %v396_v25 }
  0x3d   : >> { %2477 = vmatmul.msk.bf16.vlgmr.msra.gmra.mxu2 %vm443_vm0, %v522_v26 }
  0x3e   : >> { %2498 = vmatmul.msk.bf16.vlgmr.msra.gmra.mxu3 %vm443_vm0, %v586_v27 }
  0x4b   : >> { %2439 = vmatmul.msk.bf16.gmra.mxu0 %vm443_vm0, %v410_v32 }
  0x4c   : >> { %2457 = vmatmul.msk.bf16.gmra.mxu1 %vm443_vm0, %v397_v33 }
  0x4d   : >> { %2478 = vmatmul.msk.bf16.gmra.mxu2 %vm443_vm0, %v523_v34 }
  0x4e   : >> { %2499 = vmatmul.msk.bf16.gmra.mxu3 %vm443_vm0, %v587_v35 }
  0xb8   : >> { %v459_v36 = vpop.f32.mrf.mxu0 }
  0xb9   : >> { %v507_v37 = vpop.f32.mrf.mxu1 }
  0xba   : >> { %v508_v38 = vadd.f32 %v507_v37, %v459_v36 }
  0xc0   : >> { %v571_v39 = vpop.f32.mrf.mxu2  ;;  %v461_v43 = vpop.f32.mrf.mxu0 }
  0xc1   : >> { %v635_v40 = vpop.f32.mrf.mxu3  ;;  %v580_v41 = vadd.f32 %v571_v39, %v508_v38  ;;  %v509_v44 = vpop.f32.mrf.mxu1 }
  0xc2   : >> { %v510_v48 = vadd.f32 %v509_v44, %v461_v43 }
  0xc3   : >> { %v644_v45 = vadd.f32 %v635_v40, %v580_v41 }
  0xc5   : >> { %v651_v46 = vadd.f32 %v3188_v42, %v644_v45 }
  0xc7   : >> { %v654_v47 = vmax.f32 %v651_v46, 0.0 }
  0xc8   : >> { %v573_v49 = vpop.f32.mrf.mxu2  ;;  %v464_v52 = vpop.f32.mrf.mxu0 }
  0xc9   : >> { %v637_v50 = vpop.f32.mrf.mxu3  ;;  %659 = vst.msk [vmem:[%s657_s13] sm:$0xff] %vm658_vm1, %v654_v47  ;;  %v581_v51 = vadd.f32 %v573_v49, %v510_v48  ;;  %v512_v53 = vpop.f32.mrf.mxu1 }
  0xca   : >> { %v513_v56 = vadd.f32 %v512_v53, %v464_v52 }
  0xcb   : >> { %v645_v54 = vadd.f32 %v637_v50, %v581_v51 }
  0xcd   : >> { %v652_v55 = vadd.f32 %v3188_v42, %v645_v54 }
  0xcf   : >> { %v655_v57 = vmax.f32 %v652_v55, 0.0 }
  0xd0   : >> { %v576_v58 = vpop.f32.mrf.mxu2  ;;  %v466_v61 = vpop.f32.mrf.mxu0 }
  0xd1   : >> { %v640_v59 = vpop.f32.mrf.mxu3  ;;  %660 = vst.msk [vmem:[%s657_s13 + $0x8] sm:$0xff] %vm658_vm1, %v655_v57  ;;  %v582_v60 = vadd.f32 %v576_v58, %v513_v56  ;;  %v514_v62 = vpop.f32.mrf.mxu1 }
  0xd3   : >> { %v646_v63 = vadd.f32 %v640_v59, %v582_v60 }
  0xd5   : >> { %v653_v0 = vadd.f32 %v3188_v42, %v646_v63  ;;  %389 = sbr.rel (!%p387_p11) target bundleno = 37 (0x25), region = 166 }
  0xd7   : >> { %v656_v1 = vmax.f32 %v653_v0, 0.0 }
  0xd8   : >> { %v578_v2 = vpop.f32.mrf.mxu2 }
  0xd9   : >> { %v642_v3 = vpop.f32.mrf.mxu3  ;;  %662 = vst.msk [vmem:[%s657_s13 + $0x10] sm:$0xf] %vm661_vm2, %v656_v1 }
  0xda LB: >> { %s3959_s3 = sld [smem:[#allocation14_spill]]  ;;  %s2501_s0 = smul.u32 48, %s3277_s29  ;;  %vm1326_vm3 = vcmask 516096   ;;  %s3277_s29 = sphi %s3495_s29, %s668_s29  }
  0xdb   : >> { %s3960_s4 = sld [smem:[#allocation15_spill]]  ;;  %s2683_s12 = sshll.u32 %s3277_s29, 4 }
  0xdc   : >> { %s3531_s13 = scalar_lea.vmem [#allocation2], %s2501_s0  ;;  %s1323_s22 = scalar_lea.vmem [#allocation3], %s2683_s12 }
  0xdd   : >> { %s668_s29 = sadd.s32 1, %s3277_s29  }
  0xde   : >> { %p665_p12 = scmp.ge.s32.totalorder %s668_s29, 9  }
  0xdf   : > { %s3961_s8 = sld [smem:[#allocation17_spill]] (%p665_p12)  ;;  %vm1329_vm4 = vcmask (%p665_p12), 253952   ;;  %s3659_s25 = smov (%p665_p12), 0  }
  0xe0   : >> { %v3008_v4 = vld [vmem:[%s3959_s3 + $0x18] sm:$0xff]  ;;  %v3006_v5 = vld [vmem:[%s3959_s3 + $0x8] sm:$0xff]  ;;  %v3007_v8 = vld [vmem:[%s3959_s3 + $0x10] sm:$0xff] }
  0xe1   : >> { %v3010_v6 = vld [vmem:[%s3959_s3 + $0x28] sm:$0xff]  ;;  %v3012_v7 = vld [vmem:[%s3959_s3 + $0x38] sm:$0xff]  ;;  %711 = vmatpush.bf16.msra.mxu0 %v3008_v4  ;;  %740 = vmatpush.bf16.msra.mxu1 %v3006_v5  ;;  %v3005_v9 = vld [vmem:[%s3959_s3] sm:$0xff] }
  0xe2   : >> { %778 = vmatpush.bf16.msra.mxu2 %v3010_v6  ;;  %818 = vmatpush.bf16.msra.mxu3 %v3012_v7  ;;  %v3009_v10 = vld [vmem:[%s3959_s3 + $0x20] sm:$0xff]  ;;  %v3011_v11 = vld [vmem:[%s3959_s3 + $0x30] sm:$0xff]  ;;  %v3018_v12 = vld [vmem:[%s3959_s3 + $0x68] sm:$0xff] }
  0xe3   : >> { %v3014_v13 = vld [vmem:[%s3959_s3 + $0x48] sm:$0xff]  ;;  %v2504_v15 = vld [vmem:[%s3531_s13 + $0x11] ss:$2 sm:$0x1]  ;;  %v3020_v16 = vld [vmem:[%s3959_s3 + $0x78] sm:$0xff] }
  0xe4   : >> { %v2503_v14 = vld [vmem:[%s3531_s13 + $0x1] ss:$2 sm:$0xff]  ;;  %v672_v18 = vld [vmem:[%s3531_s13] ss:$2 sm:$0xff]  ;;  %v3016_v20 = vld [vmem:[%s3959_s3 + $0x58] sm:$0xff] }
  0xe5   : >> { %712 = vmatpush.bf16.msra.mxu0 %v3007_v8  ;;  %741 = vmatpush.bf16.msra.mxu1 %v3005_v9  ;;  %v684_v17 = vpack.c.bf16 %v2504_v15, %v2503_v14  ;;  %v2502_v19 = vld [vmem:[%s3531_s13 + $0x10] ss:$2 sm:$0x1]  ;;  %v2524_v23 = vld [vmem:[%s3531_s13 + $0x12] ss:$2 sm:$0x1] }
  0xe6   : >> { %779 = vmatpush.bf16.msra.mxu2 %v3009_v10  ;;  %819 = vmatpush.bf16.msra.mxu3 %v3011_v11  ;;  %v675_v21 = vpack.c.bf16 %v2502_v19, %v672_v18  ;;  %v2523_v22 = vld [vmem:[%s3531_s13 + $0x2] ss:$2 sm:$0xff]  ;;  %v2534_v26 = vld [vmem:[%s3531_s13 + $0x3] ss:$2 sm:$0xff]  ;;  %v3028_v34 = vld [vmem:[%s3959_s3 + $0xb8] sm:$0xff] }
  0xe7   : >> { %v3017_v24 = vld [vmem:[%s3959_s3 + $0x60] sm:$0xff]  ;;  %v752_v25 = vpack.c.bf16 %v2524_v23, %v2523_v22  ;;  %v2535_v27 = vld [vmem:[%s3531_s13 + $0x13] ss:$2 sm:$0x1]  ;;  %v3026_v30 = vld [vmem:[%s3959_s3 + $0xa8] sm:$0xff] }
  0xe8   : >> { %v3013_v28 = vld [vmem:[%s3959_s3 + $0x40] sm:$0xff]  ;;  %2513 = vmatmul.msk.bf16.vlgmr.msra.gmra.mxu0 %vm658_vm1, %v684_v17  ;;  %2522 = vmatmul.msk.bf16.vlgmr.msra.gmra.mxu1 %vm658_vm1, %v675_v21  ;;  %v792_v29 = vpack.c.bf16 %v2535_v27, %v2534_v26  ;;  %v3022_v31 = vld [vmem:[%s3959_s3 + $0x88] sm:$0xff]  ;;  %v3019_v32 = vld [vmem:[%s3959_s3 + $0x70] sm:$0xff] }
  0xe9   : >> { %860 = vmatpush.bf16.msrb.mxu0 %v3014_v13  ;;  %2533 = vmatmul.msk.bf16.vlgmr.msra.gmra.mxu2 %vm658_vm1, %v752_v25  ;;  %v3015_v33 = vld [vmem:[%s3959_s3 + $0x50] sm:$0xff]  ;;  %v3024_v35 = vld [vmem:[%s3959_s3 + $0x98] sm:$0xff]  ;;  %v3025_v36 = vld [vmem:[%s3959_s3 + $0xa0] sm:$0xff] }
  0xea   : >> { %940 = vmatpush.bf16.msrb.mxu2 %v3018_v12  ;;  %980 = vmatpush.bf16.msrb.mxu3 %v3020_v16  ;;  %v3021_v37 = vld [vmem:[%s3959_s3 + $0x80] sm:$0xff]  ;;  %v3027_v38 = vld [vmem:[%s3959_s3 + $0xb0] sm:$0xff]  ;;  %v2548_v41 = vld [vmem:[%s3531_s13 + $0x28] ss:$2 sm:$0x1] }
  0xeb   : >> { %2544 = vmatmul.msk.bf16.vlgmr.msra.gmra.mxu3 %vm658_vm1, %v792_v29  ;;  %900 = vmatpush.bf16.msrb.mxu1 %v3016_v20  ;;  %v2547_v39 = vld [vmem:[%s3531_s13 + $0x18] ss:$2 sm:$0xff]  ;;  %v3023_v40 = vld [vmem:[%s3959_s3 + $0x90] sm:$0xff]  ;;  %v2558_v42 = vld [vmem:[%s3531_s13 + $0x19] ss:$2 sm:$0xff] }
  0xec   : >> { %v2559_v43 = vld [vmem:[%s3531_s13 + $0x29] ss:$2 sm:$0x1]  ;;  %v2569_v44 = vld [vmem:[%s3531_s13 + $0x1a] ss:$2 sm:$0xff]  ;;  %v834_v48 = vpack.c.bf16 %v2548_v41, %v2547_v39  ;;  %v3035_v58 = vld [vmem:[%s3959_s3 + $0xf0] sm:$0xff] }
  0xed   : >> { %861 = vmatpush.bf16.msrb.mxu0 %v3013_v28  ;;  %v2570_v45 = vld [vmem:[%s3531_s13 + $0x2a] ss:$2 sm:$0x1]  ;;  %v2580_v46 = vld [vmem:[%s3531_s13 + $0x1b] ss:$2 sm:$0xff]  ;;  %v874_v49 = vpack.c.bf16 %v2559_v43, %v2558_v42  ;;  %v3031_v59 = vld [vmem:[%s3959_s3 + $0xd0] sm:$0xff] }
  0xee   : >> { %941 = vmatpush.bf16.msrb.mxu2 %v3017_v24  ;;  %981 = vmatpush.bf16.msrb.mxu3 %v3019_v32  ;;  %v2581_v47 = vld [vmem:[%s3531_s13 + $0x2b] ss:$2 sm:$0x1]  ;;  %v914_v50 = vpack.c.bf16 %v2570_v45, %v2569_v44  ;;  %v3036_v54 = vld [vmem:[%s3959_s3 + $0xf8] sm:$0xff]  ;;  %v3029_v56 = vld [vmem:[%s3959_s3 + $0xc0] sm:$0xff] }
  0xef   : >> { %901 = vmatpush.bf16.msrb.mxu1 %v3015_v33  ;;  %v3030_v51 = vld [vmem:[%s3959_s3 + $0xc8] sm:$0xff]  ;;  %v954_v52 = vpack.c.bf16 %v2581_v47, %v2580_v46  ;;  %v3032_v55 = vld [vmem:[%s3959_s3 + $0xd8] sm:$0xff]  ;;  %v3033_v57 = vld [vmem:[%s3959_s3 + $0xe0] sm:$0xff] }
  0xf0   : >> { %v3034_v53 = vld [vmem:[%s3959_s3 + $0xe8] sm:$0xff]  ;;  %v2593_v60 = vld [vmem:[%s3531_s13 + $0x30] ss:$2 sm:$0xff]  ;;  %v2594_v61 = vld [vmem:[%s3531_s13 + $0x40] ss:$2 sm:$0x1] }
  0xf1   : >> { %1022 = vmatpush.bf16.msra.mxu0 %v3022_v31  ;;  %v2604_v62 = vld [vmem:[%s3531_s13 + $0x31] ss:$2 sm:$0xff]  ;;  %v2605_v63 = vld [vmem:[%s3531_s13 + $0x41] ss:$2 sm:$0x1]  ;;  %v996_v4 = vpack.c.bf16 %v2594_v61, %v2593_v60 }
  0xf2   : >> { %1102 = vmatpush.bf16.msra.mxu2 %v3026_v30  ;;  %1142 = vmatpush.bf16.msra.mxu3 %v3028_v34  ;;  %v2615_v0 = vld [vmem:[%s3531_s13 + $0x32] ss:$2 sm:$0xff]  ;;  %v2616_v1 = vld [vmem:[%s3531_s13 + $0x42] ss:$2 sm:$0x1]  ;;  %v1036_v5 = vpack.c.bf16 %v2605_v63, %v2604_v62 }
  0xf3   : >> { %1062 = vmatpush.bf16.msra.mxu1 %v3024_v35  ;;  %v2626_v2 = vld [vmem:[%s3531_s13 + $0x33] ss:$2 sm:$0xff]  ;;  %v2627_v3 = vld [vmem:[%s3531_s13 + $0x43] ss:$2 sm:$0x1]  ;;  %v1076_v6 = vpack.c.bf16 %v2616_v1, %v2615_v0 }
  0xf4   : >> { %v1116_v7 = vpack.c.bf16 %v2627_v3, %v2626_v2  ;;  %v2639_v8 = vld [vmem:[%s3531_s13 + $0x48] ss:$2 sm:$0xff]  ;;  %v2640_v9 = vld [vmem:[%s3531_s13 + $0x58] ss:$2 sm:$0x1] }
  0xf5   : >> { %1023 = vmatpush.bf16.msra.mxu0 %v3021_v37  ;;  %v2650_v10 = vld [vmem:[%s3531_s13 + $0x49] ss:$2 sm:$0xff]  ;;  %v2651_v11 = vld [vmem:[%s3531_s13 + $0x59] ss:$2 sm:$0x1]  ;;  %v1158_v16 = vpack.c.bf16 %v2640_v9, %v2639_v8 }
  0xf6   : >> { %1103 = vmatpush.bf16.msra.mxu2 %v3025_v36  ;;  %1143 = vmatpush.bf16.msra.mxu3 %v3027_v38  ;;  %v2661_v12 = vld [vmem:[%s3531_s13 + $0x4a] ss:$2 sm:$0xff]  ;;  %v2662_v13 = vld [vmem:[%s3531_s13 + $0x5a] ss:$2 sm:$0x1]  ;;  %v1198_v17 = vpack.c.bf16 %v2651_v11, %v2650_v10 }
  0xf7   : >> { %1063 = vmatpush.bf16.msra.mxu1 %v3023_v40  ;;  %v2672_v14 = vld [vmem:[%s3531_s13 + $0x4b] ss:$2 sm:$0xff]  ;;  %v2673_v15 = vld [vmem:[%s3531_s13 + $0x5b] ss:$2 sm:$0x1]  ;;  %v1238_v18 = vpack.c.bf16 %v2662_v13, %v2661_v12 }
  0xf8   : >> { %2557 = vmatmul.msk.bf16.vlgmr.msrb.gmra.mxu0 %vm658_vm1, %v834_v48  ;;  %2568 = vmatmul.msk.bf16.vlgmr.msrb.gmra.mxu1 %vm658_vm1, %v874_v49  ;;  %v1278_v19 = vpack.c.bf16 %v2673_v15, %v2672_v14  ;;  %v3189_v9 = vld [vmem:[%s3960_s4] ss:$0 sm:$0xff] }
  0xf9   : >> { %2579 = vmatmul.msk.bf16.vlgmr.msrb.gmra.mxu2 %vm658_vm1, %v914_v50  ;;  %1184 = vmatpush.bf16.msrb.mxu0 %v3030_v51 }
  0xfa   : >> { %1264 = vmatpush.bf16.msrb.mxu2 %v3034_v53 }
  0xfb   : >> { %2590 = vmatmul.msk.bf16.vlgmr.msrb.gmra.mxu3 %vm658_vm1, %v954_v52  ;;  %1224 = vmatpush.bf16.msrb.mxu1 %v3032_v55 }
  0xfc   : >> { %1304 = vmatpush.bf16.msrb.mxu3 %v3036_v54 }
  0xfd   : >> { %1185 = vmatpush.bf16.msrb.mxu0 %v3029_v56 }
  0xfe   : >> { %1265 = vmatpush.bf16.msrb.mxu2 %v3033_v57 }
  0xff   : >> { %1225 = vmatpush.bf16.msrb.mxu1 %v3031_v59 }
 0x100   : >> { %1305 = vmatpush.bf16.msrb.mxu3 %v3035_v58 }
 0x108   : >> { %2603 = vmatmul.msk.bf16.vlgmr.msra.gmra.mxu0 %vm658_vm1, %v996_v4  ;;  %2614 = vmatmul.msk.bf16.vlgmr.msra.gmra.mxu1 %vm658_vm1, %v1036_v5 }
 0x109   : >> { %2625 = vmatmul.msk.bf16.vlgmr.msra.gmra.mxu2 %vm658_vm1, %v1076_v6 }
 0x10b   : >> { %2636 = vmatmul.msk.bf16.vlgmr.msra.gmra.mxu3 %vm658_vm1, %v1116_v7 }
 0x118   : >> { %2649 = vmatmul.msk.bf16.vlgmr.msrb.gmra.mxu0 %vm658_vm1, %v1158_v16  ;;  %2660 = vmatmul.msk.bf16.vlgmr.msrb.gmra.mxu1 %vm658_vm1, %v1198_v17 }
 0x119   : >> { %2671 = vmatmul.msk.bf16.vlgmr.msrb.gmra.mxu2 %vm658_vm1, %v1238_v18 }
 0x11b   : >> { %2682 = vmatmul.msk.bf16.vlgmr.msrb.gmra.mxu3 %vm658_vm1, %v1278_v19 }
 0x165   : >> { %v714_v20 = vpop.f32.mrf.mxu0  ;;  %v743_v21 = vpop.f32.mrf.mxu1 }
 0x166   : >> { %v744_v30 = vadd.f32 %v743_v21, %v714_v20 }
 0x16c   : >> { %v781_v22 = vpop.f32.mrf.mxu2 }
 0x16d   : >> { %v716_v24 = vpop.f32.mrf.mxu0  ;;  %v745_v25 = vpop.f32.mrf.mxu1  ;;  %v786_v31 = vadd.f32 %v781_v22, %v744_v30 }
 0x16e   : >> { %v821_v23 = vpop.f32.mrf.mxu3  ;;  %v746_v37 = vadd.f32 %v745_v25, %v716_v24 }
 0x16f   : >> { %v826_v33 = vadd.f32 %v821_v23, %v786_v31  ;;  %v1328_v23 = vld [vmem:[%s3961_s8] sm:$0x1] (%p665_p12) }
 0x170   : > { %1330 = vst.msk [vmem:[#allocation4] sm:$0x1] (%p665_p12), %vm1329_vm4, %v1328_v23 }
 0x174   : >> { %v783_v26 = vpop.f32.mrf.mxu2 }
 0x175   : >> { %v863_v28 = vpop.f32.mrf.mxu0  ;;  %v903_v29 = vpop.f32.mrf.mxu1  ;;  %v787_v39 = vadd.f32 %v783_v26, %v746_v37 }
 0x176   : >> { %v823_v27 = vpop.f32.mrf.mxu3  ;;  %v868_v38 = vadd.f32 %v863_v28, %v826_v33 }
 0x177   : >> { %v827_v42 = vadd.f32 %v823_v27, %v787_v39 }
 0x178   : >> { %v908_v40 = vadd.f32 %v903_v29, %v868_v38 }
 0x17c   : >> { %v943_v32 = vpop.f32.mrf.mxu2 }
 0x17d   : >> { %v865_v35 = vpop.f32.mrf.mxu0  ;;  %v905_v36 = vpop.f32.mrf.mxu1  ;;  %v948_v43 = vadd.f32 %v943_v32, %v908_v40 }
 0x17e   : >> { %v983_v34 = vpop.f32.mrf.mxu3  ;;  %v869_v47 = vadd.f32 %v865_v35, %v827_v42 }
 0x17f   : >> { %v988_v48 = vadd.f32 %v983_v34, %v948_v43 }
 0x180   : >> { %v909_v49 = vadd.f32 %v905_v36, %v869_v47 }
 0x184   : >> { %v945_v41 = vpop.f32.mrf.mxu2 }
 0x185   : >> { %v1025_v45 = vpop.f32.mrf.mxu0  ;;  %v1065_v46 = vpop.f32.mrf.mxu1  ;;  %v949_v52 = vadd.f32 %v945_v41, %v909_v49 }
 0x186   : >> { %v985_v44 = vpop.f32.mrf.mxu3  ;;  %v1030_v50 = vadd.f32 %v1025_v45, %v988_v48 }
 0x187   : >> { %v989_v57 = vadd.f32 %v985_v44, %v949_v52 }
 0x188   : >> { %v1070_v56 = vadd.f32 %v1065_v46, %v1030_v50 }
 0x18c   : >> { %v1105_v51 = vpop.f32.mrf.mxu2 }
 0x18d   : >> { %v1027_v54 = vpop.f32.mrf.mxu0  ;;  %v1067_v55 = vpop.f32.mrf.mxu1  ;;  %v1110_v58 = vadd.f32 %v1105_v51, %v1070_v56 }
 0x18e   : >> { %v1145_v53 = vpop.f32.mrf.mxu3  ;;  %v1031_v59 = vadd.f32 %v1027_v54, %v989_v57 }
 0x18f   : >> { %v1150_v61 = vadd.f32 %v1145_v53, %v1110_v58 }
 0x190   : >> { %v1071_v0 = vadd.f32 %v1067_v55, %v1031_v59 }
 0x194   : >> { %v1107_v60 = vpop.f32.mrf.mxu2 }
 0x195   : >> { %v1187_v63 = vpop.f32.mrf.mxu0  ;;  %v1227_v2 = vpop.f32.mrf.mxu1  ;;  %v1111_v3 = vadd.f32 %v1107_v60, %v1071_v0 }
 0x196   : >> { %v1147_v62 = vpop.f32.mrf.mxu3  ;;  %v1192_v1 = vadd.f32 %v1187_v63, %v1150_v61 }
 0x197   : >> { %v1151_v6 = vadd.f32 %v1147_v62, %v1111_v3 }
 0x198   : >> { %v1232_v4 = vadd.f32 %v1227_v2, %v1192_v1 }
 0x19c   : >> { %v1267_v5 = vpop.f32.mrf.mxu2 }
 0x19d   : >> { %v1272_v7 = vadd.f32 %v1267_v5, %v1232_v4  ;;  %v1189_v10 = vpop.f32.mrf.mxu0  ;;  %v1229_v14 = vpop.f32.mrf.mxu1 }
 0x19e   : >> { %v1307_v8 = vpop.f32.mrf.mxu3  ;;  %v1193_v12 = vadd.f32 %v1189_v10, %v1151_v6 }
 0x19f   : >> { %v1312_v11 = vadd.f32 %v1307_v8, %v1272_v7 }
 0x1a0   : >> { %v1233_v16 = vadd.f32 %v1229_v14, %v1193_v12 }
 0x1a1   : >> { %v1318_v13 = vadd.f32 %v3189_v9, %v1312_v11 }
 0x1a3   : >> { %v1320_v15 = vmax.f32 %v1318_v13, 0.0 }
 0x1a4   : >> { %v1269_v17 = vpop.f32.mrf.mxu2 }
 0x1a5   : >> { %1325 = vst.msk [vmem:[%s1323_s22] sm:$0xff] %vm443_vm0, %v1320_v15  ;;  %v1273_v18 = vadd.f32 %v1269_v17, %v1233_v16 }
 0x1a6   : >> { %v1309_v19 = vpop.f32.mrf.mxu3 }
 0x1a7   : >> { %v1313_v20 = vadd.f32 %v1309_v19, %v1273_v18 }
 0x1a9   : >> { %v1319_v21 = vadd.f32 %v3189_v9, %v1313_v20  ;;  %667 = sbr.rel (!%p665_p12) target bundleno = 218 (0xda), region = 177 }
 0x1ab   : >> { %v1321_v22 = vmax.f32 %v1319_v21, 0.0 }
 0x1ad   : >> { %1327 = vst.msk [vmem:[%s1323_s22 + $0x8] sm:$0x1] %vm1326_vm3, %v1321_v22 }
 0x1ae LB: >> { %s3962_s5 = sld [smem:[#allocation16_spill]]  ;;  %s2684_s13 = sshll.u32 %s3281_s25, 4  ;;  %s3281_s25 = sphi %s3659_s25, %s1336_s25  }
 0x1af   : >> { %s3710_s26 = scalar_lea.vmem [#allocation3], %s2684_s13  ;;  %s3794_s29 = smul.u32 448, %s3281_s25 }
 0x1b0   : >> { %s1336_s25 = sadd.s32 1, %s3281_s25  }
 0x1b1   : >> { %s3084_s0 = sadd.s32 128, %s3794_s29  ;;  %s3078_s13 = sadd.s32 64, %s3794_s29 }
 0x1b2   : >> { %s1811_s19 = sshra.s32 %s3794_s29, 3  ;;  %s1922_s30 = sshra.s32 %s3084_s0, 3 }
 0x1b3   : >> { %s1826_s12 = sshra.s32 %s3078_s13, 3  ;;  %s3090_s22 = sadd.s32 192, %s3794_s29 }
 0x1b4   : >> { %v3044_v24 = vld [vmem:[%s3962_s5 + $0x38] sm:$0xff]  ;;  %v3043_v28 = vld [vmem:[%s3962_s5 + $0x30] sm:$0xff]  ;;  %v3042_v32 = vld [vmem:[%s3962_s5 + $0x28] sm:$0xff]  ;;  %s2846_s15 = sshll.u32 %s1811_s19, 2  ;;  %s2884_s14 = sshll.u32 %s1922_s30, 2 }
 0x1b5   : >> { %v3040_v25 = vld [vmem:[%s3962_s5 + $0x18] sm:$0xff]  ;;  %1391 = vmatpush.bf16.msra.mxu0 %v3044_v24  ;;  %v3039_v29 = vld [vmem:[%s3962_s5 + $0x10] sm:$0xff]  ;;  %v3038_v33 = vld [vmem:[%s3962_s5 + $0x8] sm:$0xff]  ;;  %s1979_s24 = sshra.s32 %s3090_s22, 3  ;;  %s3803_s3 = scalar_lea.vmem %s3934_s7, %s2846_s15 }
 0x1b6   : >> { %v3048_v26 = vld [vmem:[%s3962_s5 + $0x58] sm:$0xff]  ;;  %1431 = vmatpush.bf16.msra.mxu1 %v3040_v25  ;;  %v3047_v30 = vld [vmem:[%s3962_s5 + $0x50] sm:$0xff]  ;;  %v3046_v34 = vld [vmem:[%s3962_s5 + $0x48] sm:$0xff]  ;;  %s3808_s8 = scalar_lea.vmem %s3934_s7, %s2884_s14  ;;  %s2903_s1 = sshll.u32 %s1979_s24, 2 }
 0x1b7   : >> { %v3052_v27 = vld [vmem:[%s3962_s5 + $0x78] sm:$0xff]  ;;  %1481 = vmatpush.bf16.msra.mxu2 %v3048_v26  ;;  %v3051_v31 = vld [vmem:[%s3962_s5 + $0x70] sm:$0xff]  ;;  %v3050_v35 = vld [vmem:[%s3962_s5 + $0x68] sm:$0xff]  ;;  %s3102_s30 = sadd.s32 320, %s3794_s29  ;;  %s3096_s22 = sadd.s32 256, %s3794_s29 }
 0x1b8   : >> { %1535 = vmatpush.bf16.msra.mxu3 %v3052_v27  ;;  %v3041_v36 = vld [vmem:[%s3962_s5 + $0x20] sm:$0xff]  ;;  %v2737_v43 = vld [vmem:[%s3710_s26 + $0x10] sm:$0x7f]  ;;  %v3056_v44 = vld [vmem:[%s3962_s5 + $0x98] sm:$0xff]  ;;  %s2091_s15 = sshra.s32 %s3102_s30, 3  ;;  %p1333_p13 = scmp.ge.s32.totalorder %s1336_s25, 7  }
 0x1b9   : >> { %1392 = vmatpush.bf16.msra.mxu0 %v3043_v28  ;;  %v3037_v37 = vld [vmem:[%s3962_s5] sm:$0xff]  ;;  %v3064_v45 = vld [vmem:[%s3962_s5 + $0xd8] sm:$0xff]  ;;  %v1495_v49 = vpack.c.bf16 %v2737_v43, %v2737_v43  ;;  %v3055_v52 = vld [vmem:[%s3962_s5 + $0x90] sm:$0xff]  ;;  %s2941_s24 = sshll.u32 %s2091_s15, 2  ;;  %vm2250_vm5 = vcmask (%p1333_p13), 24576  }
 0x1ba   : >> { %1432 = vmatpush.bf16.msra.mxu1 %v3039_v29  ;;  %v3045_v38 = vld [vmem:[%s3962_s5 + $0x40] sm:$0xff]  ;;  %v3068_v50 = vld [vmem:[%s3962_s5 + $0xf8] sm:$0xff]  ;;  %v3063_v53 = vld [vmem:[%s3962_s5 + $0xd0] sm:$0xff]  ;;  %s3839_s2 = scalar_lea.vmem %s3934_s7, %s2941_s24 }
 0x1bb   : >> { %1482 = vmatpush.bf16.msra.mxu2 %v3047_v30  ;;  %v1349_v39 = vld [vmem:[%s3710_s26 + $0x1] sm:$0x7f]  ;;  %v3060_v51 = vld [vmem:[%s3962_s5 + $0xb8] sm:$0xff]  ;;  %v3067_v54 = vld [vmem:[%s3962_s5 + $0xf0] sm:$0xff] }
 0x1bc   : >> { %1536 = vmatpush.bf16.msra.mxu3 %v3051_v31  ;;  %v1339_v40 = vld [vmem:[%s3710_s26] sm:$0x7f]  ;;  %v1350_v46 = vpack.c.bf16 %v1349_v39, %v1349_v39  ;;  %v3059_v55 = vld [vmem:[%s3962_s5 + $0xb0] sm:$0xff]  ;;  %v3054_v56 = vld [vmem:[%s3962_s5 + $0x88] sm:$0xff] }
 0x1bd   : >> { %1393 = vmatpush.bf16.msra.mxu0 %v3042_v32  ;;  %v3049_v41 = vld [vmem:[%s3962_s5 + $0x60] sm:$0xff]  ;;  %v1340_v47 = vpack.c.bf16 %v1339_v40, %v1339_v40  ;;  %v3062_v57 = vld [vmem:[%s3962_s5 + $0xc8] sm:$0xff]  ;;  %v3072_v62 = vld [vmem:[%s3962_s5 + $0x118] sm:$0xff] }
 0x1be   : >> { %1433 = vmatpush.bf16.msra.mxu1 %v3038_v33  ;;  %v1440_v42 = vld [vmem:[%s3710_s26 + $0x2] sm:$0x7f]  ;;  %v2755_v0 = vld [vmem:[%s3710_s26 + $0x11] sm:$0x7f]  ;;  %v3076_v14 = vld [vmem:[%s3803_s3 + $0x18] sm:$0xff] }
 0x1bf   : >> { %1483 = vmatpush.bf16.msra.mxu2 %v3046_v34  ;;  %v1441_v48 = vpack.c.bf16 %v1440_v42, %v1440_v42  ;;  %v3066_v58 = vld [vmem:[%s3962_s5 + $0xe8] sm:$0xff]  ;;  %v3053_v60 = vld [vmem:[%s3962_s5 + $0x80] sm:$0xff]  ;;  %v2773_v4 = vld [vmem:[%s3710_s26 + $0x12] sm:$0x7f]  ;;  %v1546_v5 = vpack.c.bf16 %v2755_v0, %v2755_v0 }
 0x1c0   : >> { %1537 = vmatpush.bf16.msra.mxu3 %v3050_v35  ;;  %v3058_v59 = vld [vmem:[%s3962_s5 + $0xa8] sm:$0xff]  ;;  %v3061_v61 = vld [vmem:[%s3962_s5 + $0xc0] sm:$0xff]  ;;  %v1597_v8 = vpack.c.bf16 %v2773_v4, %v2773_v4  ;;  %v3071_v9 = vld [vmem:[%s3962_s5 + $0x110] sm:$0xff] }
 0x1c1   : >> { %1394 = vmatpush.bf16.msra.mxu0 %v3041_v36  ;;  %v3065_v63 = vld [vmem:[%s3962_s5 + $0xe0] sm:$0xff]  ;;  %v3070_v10 = vld [vmem:[%s3962_s5 + $0x108] sm:$0xff]  ;;  %v3088_v15 = vld [vmem:[%s3808_s8 + $0x18] sm:$0xff] }
 0x1c2   : >> { %1434 = vmatpush.bf16.msra.mxu1 %v3037_v37  ;;  %v3057_v1 = vld [vmem:[%s3962_s5 + $0xa0] sm:$0xff]  ;;  %v3075_v17 = vld [vmem:[%s3803_s3 + $0x10] sm:$0xff]  ;;  %v3074_v23 = vld [vmem:[%s3803_s3 + $0x8] sm:$0xff] }
 0x1c3   : >> { %1484 = vmatpush.bf16.msra.mxu2 %v3045_v38  ;;  %v2792_v2 = vld [vmem:[%s3710_s26 + $0x20] sm:$0x7f]  ;;  %v3087_v19 = vld [vmem:[%s3808_s8 + $0x10] sm:$0xff]  ;;  %v3086_v25 = vld [vmem:[%s3808_s8 + $0x8] sm:$0xff] }
 0x1c4   : >> { %1538 = vmatpush.bf16.msra.mxu3 %v3049_v41  ;;  %2701 = vmatmul.msk.bf16.vlgmr.msra.gmra.mxu0 %vm443_vm0, %v1350_v46  ;;  %v2810_v3 = vld [vmem:[%s3710_s26 + $0x21] sm:$0x7f]  ;;  %v1651_v6 = vpack.c.bf16 %v2792_v2, %v2792_v2  ;;  %v3106_v36 = vld [vmem:[%s3839_s2 + $0x18] sm:$0xff]  ;;  %v3105_v40 = vld [vmem:[%s3839_s2 + $0x10] sm:$0xff] }
 0x1c5   : >> { %1586 = vmatpush.bf16.msrb.mxu0 %v3056_v44  ;;  %2718 = vmatmul.msk.bf16.vlgmr.msra.gmra.mxu1 %vm443_vm0, %v1340_v47  ;;  %v1702_v7 = vpack.c.bf16 %v2810_v3, %v2810_v3  ;;  %v3069_v11 = vld [vmem:[%s3962_s5 + $0x100] sm:$0xff]  ;;  %s3821_s5 = scalar_lea.vmem %s3934_s7, %s2903_s1  ;;  %v3104_v46 = vld [vmem:[%s3839_s2 + $0x8] sm:$0xff] }
 0x1c6   : >> { %2735 = vmatmul.msk.bf16.vlgmr.msra.gmra.mxu2 %vm443_vm0, %v1441_v48  ;;  %1637 = vmatpush.bf16.msrb.mxu1 %v3060_v51  ;;  %v2828_v12 = vld [vmem:[%s3710_s26 + $0x22] sm:$0x7f]  ;;  %s2848_s26 = sshll.u32 %s1826_s12, 2  ;;  %v3094_v18 = vld [vmem:[%s3821_s5 + $0x18] sm:$0xff]  ;;  %s3108_s12 = sadd.s32 384, %s3794_s29  ;;  %v3093_v24 = vld [vmem:[%s3821_s5 + $0x10] sm:$0xff] }
 0x1c7   : >> { %1691 = vmatpush.bf16.msrb.mxu2 %v3064_v45  ;;  %2754 = vmatmul.msk.bf16.vlgmr.msra.gmra.mxu3 %vm443_vm0, %v1495_v49  ;;  %v1753_v13 = vpack.c.bf16 %v2828_v12, %v2828_v12  ;;  %s3813_s19 = scalar_lea.vmem %s3934_s7, %s2848_s26  ;;  %s2147_s14 = sshra.s32 %s3108_s12, 3  ;;  %v3073_v27 = vld [vmem:[%s3803_s3] sm:$0xff]  ;;  %v3092_v28 = vld [vmem:[%s3821_s5 + $0x8] sm:$0xff] }
 0x1c8   : >> { %1742 = vmatpush.bf16.msrb.mxu3 %v3068_v50  ;;  %v3082_v16 = vld [vmem:[%s3813_s19 + $0x18] sm:$0xff]  ;;  %v3081_v20 = vld [vmem:[%s3813_s19 + $0x10] sm:$0xff]  ;;  %s2035_s26 = sshra.s32 %s3096_s22, 3  ;;  %v3080_v26 = vld [vmem:[%s3813_s19 + $0x8] sm:$0xff]  ;;  %s2960_s29 = sshll.u32 %s2147_s14, 2 }
 0x1c9   : >> { %1587 = vmatpush.bf16.msrb.mxu0 %v3055_v52  ;;  %s2922_s0 = sshll.u32 %s2035_s26, 2  ;;  %v3085_v31 = vld [vmem:[%s3808_s8] sm:$0xff]  ;;  %s3846_s30 = scalar_lea.vmem %s3934_s7, %s2960_s29 }
 0x1ca   : >> { %1638 = vmatpush.bf16.msrb.mxu1 %v3059_v55  ;;  %v3079_v32 = vld [vmem:[%s3813_s19] sm:$0xff]  ;;  %s3851_s15 = scalar_lea.vmem %s3934_s7, %s2922_s0  ;;  %v3112_v37 = vld [vmem:[%s3846_s30 + $0x18] sm:$0xff]  ;;  %v3111_v41 = vld [vmem:[%s3846_s30 + $0x10] sm:$0xff]  ;;  %s3284_s0 = smov (%p1333_p13), 127  }
 0x1cb   : >> { %1692 = vmatpush.bf16.msrb.mxu2 %v3063_v53  ;;  %v3091_v35 = vld [vmem:[%s3821_s5] sm:$0xff]  ;;  %v3100_v38 = vld [vmem:[%s3851_s15 + $0x18] sm:$0xff]  ;;  %v3099_v42 = vld [vmem:[%s3851_s15 + $0x10] sm:$0xff]  ;;  %s2279_s3 = sshll.u32 (%p1333_p13), %s3404_s16, 4  ;;  %s2280_s3 = int_to_ptr.vmem [resolvable:$true] %s2279_s3 }
 0x1cc   : >> { %1743 = vmatpush.bf16.msrb.mxu3 %v3067_v54  ;;  %v3110_v48 = vld [vmem:[%s3846_s30 + $0x8] sm:$0xff]  ;;  %v3103_v52 = vld [vmem:[%s3839_s2] sm:$0xff]  ;;  %s2277_s2 = scalar_lea.hbm (%p1333_p13), %s3938_s11, %s3367_s21  ;;  %s3215_s21 = scalar_lea.hbm (%p1333_p13), %s3938_s11, 2 }
 0x1cd   : >> { %1588 = vmatpush.bf16.msrb.mxu0 %v3054_v56  ;;  %v3098_v49 = vld [vmem:[%s3851_s15 + $0x8] sm:$0xff]  ;;  %v3109_v54 = vld [vmem:[%s3846_s30] sm:$0xff]  ;;  %s2281_s4 = sshll.u32 (%p1333_p13), %s2277_s2, 4  ;;  %s3963_s30 = sand.u32 (%p1333_p13), 1, %s3261_s18   ;;  %s2282_s4 = int_to_ptr.hbm [resolvable:$true] %s2281_s4 }
 0x1ce   : >> { %1639 = vmatpush.bf16.msrb.mxu1 %v3058_v59  ;;  %v3097_v55 = vld [vmem:[%s3851_s15] sm:$0xff]  ;;  %s2269_s12 = scalar_lea.sflag (%p1333_p13), [#allocation6], %s3963_s30  ;;  %s3209_s22 = sshra.s32 (%p1333_p13), %s2282_s4, 4  ;;  %s3210_s22 = int_to_ptr.hbm [resolvable:$true] %s3209_s22 }
 0x1cf   : >> { %1693 = vmatpush.bf16.msrb.mxu2 %v3062_v57  ;;  %s3211_s15 = scalar_lea.hbm (%p1333_p13), %s3210_s22, 1  ;;  %p3216_p3 = scmp.lt.s32.totalorder (%p1333_p13), %s3210_s22, %s3938_s11 }
 0x1d0   : >> { %1744 = vmatpush.bf16.msrb.mxu3 %v3066_v58  ;;  %p3212_p0 = scmp.ne.s32.totalorder (%p1333_p13), %s3210_s22, %s3211_s15  ;;  %p3217_p4 = scmp.lt.s32.totalorder (%p1333_p13), %s3215_s21, %s3211_s15 }
 0x1d1   : >> { %1589 = vmatpush.bf16.msrb.mxu0 %v3053_v60 }
 0x1d2   : >> { %1640 = vmatpush.bf16.msrb.mxu1 %v3057_v1  ;;  %v3190_v1 = vld [vmem:[%s3933_s6] ss:$0 sm:$0xff]  ;;  %p3213_p1 = pnand (%p1333_p13), %p3212_p0, %p3384_p5  ;;  %p3218_p7 = por (%p1333_p13), %p3217_p4, %p3216_p3 }
 0x1d3   : >> { %1694 = vmatpush.bf16.msrb.mxu2 %v3061_v61 }
 0x1d4   : >> { %1745 = vmatpush.bf16.msrb.mxu3 %v3065_v63  ;;  %2772 = vmatmul.msk.bf16.vlgmr.msrb.gmra.mxu0 %vm443_vm0, %v1546_v5  ;;  %p3214_p2 = pneg (%p1333_p13), %p3213_p1 }
 0x1d5   : >> { %1793 = vmatpush.bf16.msra.mxu0 %v3072_v62  ;;  %2790 = vmatmul.msk.bf16.vlgmr.msrb.gmra.mxu1 %vm443_vm0, %v1597_v8 }
 0x1d6   : >> { %2809 = vmatmul.msk.bf16.vlgmr.msrb.gmra.mxu2 %vm443_vm0, %v1651_v6  ;;  %1872 = vmatpush.bf16.msra.mxu1 %v3082_v16  ;;  %p3219_p8 = pnand (%p1333_p13), %p3218_p7, %p3214_p2 }
 0x1d7   : >> { %2827 = vmatmul.msk.bf16.vlgmr.msrb.gmra.mxu3 %vm443_vm0, %v1702_v7  ;;  %1911 = vmatpush.bf16.msra.mxu2 %v3076_v14 }
 0x1d8   : >> { %1967 = vmatpush.bf16.msra.mxu3 %v3088_v15 }
 0x1d9   : >> { %1794 = vmatpush.bf16.msra.mxu0 %v3071_v9 }
 0x1da   : >> { %1873 = vmatpush.bf16.msra.mxu1 %v3081_v20 }
 0x1db   : >> { %1912 = vmatpush.bf16.msra.mxu2 %v3075_v17 }
 0x1dc   : >> { %1968 = vmatpush.bf16.msra.mxu3 %v3087_v19 }
 0x1dd   : >> { %1795 = vmatpush.bf16.msra.mxu0 %v3070_v10 }
 0x1de   : >> { %1874 = vmatpush.bf16.msra.mxu1 %v3080_v26 }
 0x1df   : >> { %1913 = vmatpush.bf16.msra.mxu2 %v3074_v23 }
 0x1e0   : >> { %1969 = vmatpush.bf16.msra.mxu3 %v3086_v25 }
 0x1e1   : >> { %1796 = vmatpush.bf16.msra.mxu0 %v3069_v11 }
 0x1e2   : >> { %1875 = vmatpush.bf16.msra.mxu1 %v3079_v32 }
 0x1e3   : >> { %1914 = vmatpush.bf16.msra.mxu2 %v3073_v27 }
 0x1e4   : >> { %2845 = vmatmul.msk.bf16.vlgmr.msra.gmra.mxu0 %vm443_vm0, %v1753_v13  ;;  %1970 = vmatpush.bf16.msra.mxu3 %v3085_v31 }
 0x1e5   : >> { %2023 = vmatpush.bf16.msrb.mxu0 %v3094_v18 }
 0x1e6   : >> { %2079 = vmatpush.bf16.msrb.mxu1 %v3100_v38 }
 0x1e7   : >> { %2135 = vmatpush.bf16.msrb.mxu2 %v3106_v36  ;;  %v3114_v36 = vld [vmem:[%s3936_s9 + $0x8] sm:$0xff] (%p1333_p13) }
 0x1e8   : >> { %2191 = vmatpush.bf16.msrb.mxu3 %v3112_v37 }
 0x1e9   : >> { %2024 = vmatpush.bf16.msrb.mxu0 %v3093_v24 }
 0x1ea   : >> { %2080 = vmatpush.bf16.msrb.mxu1 %v3099_v42  ;;  %v2211_v42 = vld [vmem:[%s3937_s10] sm:$0x1] (%p1333_p13) }
 0x1eb   : >> { %2136 = vmatpush.bf16.msrb.mxu2 %v3105_v40 }
 0x1ec   : >> { %2192 = vmatpush.bf16.msrb.mxu3 %v3111_v41  ;;  %v3283_v41 = vmov (%p1333_p13), 0  }
 0x1ed   : >> { %2025 = vmatpush.bf16.msrb.mxu0 %v3092_v28  ;;  %3191 = vset.pattern.permute.xlu1 (%p1333_p13), %v3283_v41 }
 0x1ee   : >> { %2081 = vmatpush.bf16.msrb.mxu1 %v3098_v49  ;;  %3192 = vset.pattern.permute.xlu0 (%p1333_p13), %v3283_v41 }
 0x1ef   : >> { %2137 = vmatpush.bf16.msrb.mxu2 %v3104_v46 }
 0x1f0   : >> { %2193 = vmatpush.bf16.msrb.mxu3 %v3110_v48  ;;  %v3285_v48 = vmov (%p1333_p13), 4.0  }
 0x1f1   : >> { %2026 = vmatpush.bf16.msrb.mxu0 %v3091_v35  ;;  %3193 = vrcp.f32 (%p1333_p13), %v3285_v48 }
 0x1f2   : >> { %2082 = vmatpush.bf16.msrb.mxu1 %v3097_v55 }
 0x1f3   : >> { %2138 = vmatpush.bf16.msrb.mxu2 %v3103_v52 }
 0x1f4   : >> { %2194 = vmatpush.bf16.msrb.mxu3 %v3109_v54 }
 0x1f5   : > { %2234 = vmatpush.bf16.msra.mxu0 (%p1333_p13), %v3114_v36 }
 0x1f7   : > { %v3194_v49 = vpop.eup (%p1333_p13), %3193 }
 0x1f8   : > { %vm2259_vm6 = vweird.f32 (%p1333_p13), %v3194_v49 }
 0x241   : >> { %v1396_v21 = vpop.f32.mrf.mxu0 }
 0x242   : >> { %v1436_v22 = vpop.f32.mrf.mxu1 }
 0x243   : >> { %v1437_v39 = vadd.f32 %v1436_v22, %v1396_v21 }
 0x249   : >> { %v1486_v29 = vpop.f32.mrf.mxu2  ;;  %v1398_v33 = vpop.f32.mrf.mxu0 }
 0x24a   : >> { %v1540_v30 = vpop.f32.mrf.mxu3  ;;  %v1438_v34 = vpop.f32.mrf.mxu1  ;;  %v1490_v43 = vadd.f32 %v1486_v29, %v1437_v39  ;;  %v3113_v39 = vld [vmem:[%s3936_s9] sm:$0xff] (%p1333_p13) }
 0x24b   : > { %2235 = vmatpush.bf16.msra.mxu0 (%p1333_p13), %v3113_v39 }
 0x24c   : >> { %v1544_v51 = vadd.f32 %v1540_v30, %v1490_v43  ;;  %v2201_v30 = vld [vmem:[#allocation4] sm:$0x1] }
 0x251   : >> { %v1488_v44 = vpop.f32.mrf.mxu2  ;;  %v1591_v47 = vpop.f32.mrf.mxu0 }
 0x252   : >> { %v1542_v45 = vpop.f32.mrf.mxu3  ;;  %v1642_v50 = vpop.f32.mrf.mxu1  ;;  %v1595_v53 = vadd.f32 %v1591_v47, %v1544_v51 }
 0x254   : >> { %v1646_v59 = vadd.f32 %v1642_v50, %v1595_v53  ;;  %v2255_v50 = vmul.f32 (%p1333_p13), 4.0, %v3194_v49 }
 0x256   : > { %v2256_v51 = vsub.f32 (%p1333_p13), 1.0, %v2255_v50 }
 0x258   : > { %v2257_v52 = vmul.f32 (%p1333_p13), %v3194_v49, %v2256_v51 }
 0x259   : >> { %v1696_v56 = vpop.f32.mrf.mxu2  ;;  %v1593_v58 = vpop.f32.mrf.mxu0 }
 0x25a   : >> { %v1747_v57 = vpop.f32.mrf.mxu3  ;;  %v1644_v60 = vpop.f32.mrf.mxu1  ;;  %v1700_v61 = vadd.f32 %v1696_v56, %v1646_v59  ;;  %v2258_v53 = vadd.f32 (%p1333_p13), %v3194_v49, %v2257_v52 }
 0x25c   : >> { %v1751_v62 = vadd.f32 %v1747_v57, %v1700_v61  ;;  %v2260_v55 = vsel (%p1333_p13), %vm2259_vm6, %v3194_v49, %v2258_v53 }
 0x261   : >> { %v1698_v63 = vpop.f32.mrf.mxu2  ;;  %v1798_v2 = vpop.f32.mrf.mxu0 }
 0x262   : >> { %v1749_v0 = vpop.f32.mrf.mxu3  ;;  %v1802_v3 = vadd.f32 %v1798_v2, %v1751_v62 }
 0x264   : >> { %v1807_v4 = vadd.f32 %v3190_v1, %v1802_v3 }
 0x266   : >> { %v1808_v5 = vmax.f32 %v1807_v4, 0.0 }
 0x268   : >> { %v1810_v6 = vpack.c.bf16 %v1808_v5, %v1808_v5 }
 0x269   : >> { %v1800_v7 = vpop.f32.mrf.mxu0 }
 0x26a   : >> { %2882 = vmatmul.msk.bf16.vlgmr.msra.gmra.mxu2 %vm443_vm0, %v1810_v6  ;;  %v1839_v8 = vshrl.u32 %v1810_v6, 16  ;;  %v1935_v9 = vrot.slane %v1810_v6, 1  ;;  %v2047_v12 = vrot.slane %v1810_v6, 2  ;;  %v2159_v13 = vrot.slane %v1810_v6, 3 }
 0x26c   : >> { %2865 = vmatmul.msk.bf16.vlgmr.msra.gmra.mxu1 %vm443_vm0, %v1839_v8  ;;  %2901 = vmatmul.msk.bf16.vlgmr.msra.gmra.mxu3 %vm443_vm0, %v1935_v9  ;;  %v1991_v10 = vrot.slane %v1839_v8, 1  ;;  %v2103_v11 = vrot.slane %v1839_v8, 2 }
 0x26e   : >> { %2920 = vmatmul.msk.bf16.vlgmr.msrb.gmra.mxu0 %vm443_vm0, %v1991_v10 }
 0x27a   : >> { %2958 = vmatmul.msk.bf16.vlgmr.msrb.gmra.mxu2 %vm443_vm0, %v2103_v11 }
 0x27c   : >> { %2939 = vmatmul.msk.bf16.vlgmr.msrb.gmra.mxu1 %vm443_vm0, %v2047_v12  ;;  %2977 = vmatmul.msk.bf16.vlgmr.msrb.gmra.mxu3 %vm443_vm0, %v2159_v13 }
 0x2e9   : >> { %v1877_v14 = vpop.f32.mrf.mxu1 }
 0x2eb   : >> { %v2028_v15 = vpop.f32.mrf.mxu0 }
 0x2ed   : >> { %v1916_v16 = vpop.f32.mrf.mxu2 }
 0x2ee   : >> { %v1917_v19 = vadd.f32 %v1916_v16, %v1877_v14 }
 0x2ef   : >> { %v1972_v17 = vpop.f32.mrf.mxu3 }
 0x2f0   : >> { %v1976_v22 = vadd.f32 %v1972_v17, %v1917_v19 }
 0x2f1   : >> { %v1879_v18 = vpop.f32.mrf.mxu1 }
 0x2f2   : >> { %v2032_v25 = vadd.f32 %v2028_v15, %v1976_v22 }
 0x2f3   : >> { %v2030_v20 = vpop.f32.mrf.mxu0 }
 0x2f5   : >> { %v1918_v21 = vpop.f32.mrf.mxu2 }
 0x2f7   : >> { %v1974_v23 = vpop.f32.mrf.mxu3 }
 0x2f9   : >> { %v2084_v24 = vpop.f32.mrf.mxu1 }
 0x2fa   : >> { %v2088_v26 = vadd.f32 %v2084_v24, %v2032_v25 }
 0x2fd   : >> { %v2140_v27 = vpop.f32.mrf.mxu2 }
 0x2fe   : >> { %v2144_v28 = vadd.f32 %v2140_v27, %v2088_v26 }
 0x2ff   : >> { %v2196_v29 = vpop.f32.mrf.mxu3 }
 0x300   : >> { %v2200_v31 = vadd.f32 %v2196_v29, %v2144_v28 }
 0x301   : >> { %v2086_v32 = vpop.f32.mrf.mxu1 }
 0x302   : >> { %v2202_v33 = vadd.f32 %v2201_v30, %v2200_v31 }
 0x303   : > { %1335 = sbr.rel (!%p1333_p13) target bundleno = 430 (0x1ae), region = 188 }
 0x304   : >> { %2203 = vst.msk [vmem:[#allocation4] sm:$0x1] %vm1329_vm4, %v2202_v33 }
 0x305   : >> { %v2142_v34 = vpop.f32.mrf.mxu2 }
 0x307   : >> { %v2198_v35 = vpop.f32.mrf.mxu3 }
 0x30b   : > { %v2204_v37 = vld [vmem:[#allocation4] sm:$0x1] }
 0x30c   : > { %v2205_v38 = vmax.f32 %v2204_v37, 0.0 }
 0x30e   : > { %v2206_v40 = vpack.c.bf16 %v2205_v38, %v2205_v38 }
 0x310   : > { %2986 = vmatmul.msk.bf16.vlgmr.msra.gmra.mxu0 %vm658_vm1, %v2206_v40 }
 0x38d   : > { %v2237_v43 = vpop.f32.mrf.mxu0 }
 0x38e   : > { %v2238_v44 = vadd.f32 %v2237_v43, %v2211_v42 }
 0x390   : > { %2243 = vperm.xlu1 %3191, %v2238_v44   ;;  %2247 = vrot.lane.b32.xlu0 %v2238_v44, %s3284_s0 }
 0x395   : > { %v2239_v45 = vpop.f32.mrf.mxu0 }
 0x402   : > { %v2248_v46 = vpop.permute.xlu0 %2247  ;;  %v2244_v54 = vpop.permute.xlu1 %2243 }
 0x403   : > { %v2251_v47 = vsel %vm2250_vm5, %v2248_v46, 0.0  ;;  %v2246_v57 = vadd.f32 %v2244_v54, %v2238_v44 }
 0x404   : > { %2252 = vadd.xlane.f32.xlu0 %v2251_v47 }
 0x477   : > { %v2253_v56 = vpop.xlane.xlu0 %2252 }
 0x478   : > { %v2261_v58 = vmul.f32 %v2260_v55, %v2253_v56 }
 0x47a   : > { %v2262_v59 = vsub.f32 %v2246_v57, %v2261_v58 }
 0x47c   : > { %2264 = vrot.lane.b32.xlu1 %v2262_v59, %s3284_s0 }
 0x4ee   : > { %v2265_v60 = vpop.permute.xlu1 %2264 }
 0x4ef   : > { %2267 = vst.msk [vmem:[%s3404_s16] sm:$0x1] %vm2250_vm5, %v2265_v60 }
 0x4f0   : > { %3222 = shalt.err (!%p3219_p8)
}
 0x4f1   : > { %3122 = dma.vmem_to_hbm [thread:$0]  (%p3384_p5), %s2280_s3, 16, %s2282_s4, %s2269_s12  }
 0x4f2 PF: > { %p3128_p9 = scmp.ge.s32.totalorder %s3269_s20, 2  ;;  %s2293_s16 = sand.u32 1, %s3257_s17  }
 0x4f3   : > { %s2294_s26 = scalar_lea.sflag [#allocation6], %s2293_s16 }
 0x4f4   : > { %p3125_p10 = pnand %p3128_p9, %p3388_p6 }
 0x4f6   : > { %p3126_p11 = pneg %p3125_p10 }
 0x4f8   : > { %3252 = dma.done.wait (%p3126_p11), %s2294_s26, 16  }
 0x4f9   : > { %3254 = vsyncadd (%p3126_p11), %s2294_s26, 4294967280  ;;  %s3964_s24 = sld [smem:[#allocation8_spill]]  ;;  %p21_p12 = scmp.ge.s32.totalorder %s3371_s23, 4  }
 0x4fa   : > { %s3965_s19 = sld [smem:[#allocation9_spill]]  ;;  %s3966_s17 = smov %s3261_s18 }
 0x4fb   : > { %s3968_s20 = smov %s3371_s23  ;;  %23 = sbr.rel (!%p21_p12) target bundleno = 11 (0xb), region = 199 }
 0x4ff   : > { %s3967_s18 = smov %s3964_s24 }
 0x500   :  { %2299 = vsyncpa [#allocation6], 1 }
 0x501   :  { %2301 = vsyncpa [#allocation6 + $0x1], 1 }

</bundles_post_ra>
